<compile_context>
chip_gen: v5e
topology: v5e:2x2
jax: 0.10.0
libtpu: 0.0.40
codegen_flags: <defaults>
</compile_context>

<pallas_src>
import functools

import jax
import jax.numpy as jnp
from jax.experimental import pallas as pl
from jax.experimental.pallas import tpu as pltpu

_LANE = 128
_SUB = 8
_LAB_THRESHOLD = 0.008856
# ~ (4/3) * 2^23 * (127 - 0.045): bias for the inverse-cube-root exponent trick.
_CBRT_MAGIC = 1419967116.0


def _fast_cbrt(t):
    """Cube root of strictly positive t, pure VPU (no EUP transcendentals).

    Exponent-bit-trick initial guess for t^(-1/3), refined with 2 division-free
    Newton steps (~2e-5 rel. error on [0.0088, 1.2]); then cbrt(t) = t * r * r.
    (The int->f32->int round trip loses a few low bits of the guess; Newton
    absorbs it, well inside the tolerance of an L1 loss.)
    """
    bits = pltpu.bitcast(t, jnp.int32).astype(jnp.float32)
    guess_bits = (_CBRT_MAGIC - bits * (1.0 / 3.0)).astype(jnp.int32)
    r = pltpu.bitcast(guess_bits, jnp.float32)          # r ~= t^(-1/3)
    t3 = t * (1.0 / 3.0)
    for _ in range(2):                                   # r <- r*(4 - t*r^3)/3
        r = r * (4.0 / 3.0 - t3 * (r * r * r))
    return t * r * r


def _srgb_to_linear(c):
    # Base clamped >= 0 so slightly out-of-range inputs can't poison the pow.
    # Gamma pow stays on the EUP (free slot next to the VALU-bound rest on
    # v6e/v7x; on v5e a VPU polynomial fit could replace it if EUP binds).
    base = jnp.maximum((c + 0.055) * (1.0 / 1.055), 0.0)
    return jnp.where(c > 0.04045, jnp.power(base, 2.4), c * (1.0 / 12.92))


def _lab_f(t):
    cube = _fast_cbrt(jnp.maximum(t, _LAB_THRESHOLD))
    return jnp.where(t > _LAB_THRESHOLD, cube, 7.787 * t + 4.0 / 29.0)


def _rgb_to_fxyz(r, g, b):
    """f(X/Xn), f(Y/Yn), f(Z/Zn) of kornia.rgb_to_lab for inputs in [-1, 1].
    The white-point divides are folded into the matrix at trace time; the
    L/a/b affine constants are dropped (they cancel in the L1 differences)."""
    r = (r + 1.0) * 0.5
    g = (g + 1.0) * 0.5
    b = (b + 1.0) * 0.5
    rl, gl, bl = _srgb_to_linear(r), _srgb_to_linear(g), _srgb_to_linear(b)
    x = (0.412453 / 0.95047) * rl + (0.357580 / 0.95047) * gl + (0.180423 / 0.95047) * bl
    y = 0.212671 * rl + 0.715160 * gl + 0.072169 * bl
    z = (0.019334 / 1.08883) * rl + (0.119193 / 1.08883) * gl + (0.950227 / 1.08883) * bl
    return _lab_f(x), _lab_f(y), _lab_f(z)


def _color_loss_kernel(pred_ref, target_ref, out_ref, *,
                       tile_rows, chunk, valid_pixels, needs_mask):
    # pred_ref / target_ref: (1, 3, tile_rows, 128) tiles in VMEM (native dtype).
    # out_ref: (1, 1, 3, 8, 128) f32 partial sums (|dfy|, |d(fx-fy)|, |d(fy-fz)|).
    rb = pl.program_id(1)
    n_chunks = tile_rows // chunk  # static; tile_rows is a multiple of chunk (=8)

    if needs_mask:
        row_iota = jax.lax.broadcasted_iota(jnp.int32, (chunk, _LANE), 0)
        lane_iota = jax.lax.broadcasted_iota(jnp.int32, (chunk, _LANE), 1)
        local_pix = row_iota * _LANE + lane_iota
        tile_base = rb * (tile_rows * _LANE)

    def body(i, carry):
        s_y, s_xy, s_yz = carry
        r0 = pl.multiple_of(i * chunk, chunk)

        def load(ref, c):
            return ref[0, c, pl.ds(r0, chunk), :].astype(jnp.float32)

        fxp, fyp, fzp = _rgb_to_fxyz(load(pred_ref, 0), load(pred_ref, 1), load(pred_ref, 2))
        fxt, fyt, fzt = _rgb_to_fxyz(load(target_ref, 0), load(target_ref, 1), load(target_ref, 2))

        dfy = fyp - fyt
        d_y = jnp.abs(dfy)                    # -> L term  (x 116/100 in JAX)
        d_xy = jnp.abs((fxp - fxt) - dfy)     # -> a term  (x 500/255 in JAX)
        d_yz = jnp.abs(dfy - (fzp - fzt))     # -> b term  (x 200/255 in JAX)

        if needs_mask:
            pix = tile_base + r0 * _LANE + local_pix
            m = pix < valid_pixels
            d_y = jnp.where(m, d_y, 0.0)      # padded / OOB lanes contribute 0
            d_xy = jnp.where(m, d_xy, 0.0)
            d_yz = jnp.where(m, d_yz, 0.0)

        return (s_y + d_y, s_xy + d_xy, s_yz + d_yz)

    zeros = jnp.zeros((chunk, _LANE), jnp.float32)
    s_y, s_xy, s_yz = jax.lax.fori_loop(0, n_chunks, body, (zeros, zeros, zeros))
    out_ref[0, 0, 0] = s_y
    out_ref[0, 0, 1] = s_xy
    out_ref[0, 0, 2] = s_yz


def color_loss(pred, target, *, max_rows_per_tile=1024):
    """pred, target: NCHW RGB arrays with values in [-1, 1].
    Returns l1(L/100) + 0.5 * l1((ab+128)/255) in LAB space, like ColorLoss."""
    N, C, H, W = pred.shape
    assert C == 3, "ColorLoss expects 3-channel RGB inputs"
    P = H * W

    # Lane-dense layout (N, 3, R8, 128), R8 a multiple of 8. Padding only when
    # H*W is not already a multiple of 1024; everything else (ragged last
    # row-block) is masked in-kernel, and inputs keep their native dtype.
    P_pad = pl.cdiv(P, _SUB * _LANE) * (_SUB * _LANE)
    R8 = P_pad // _LANE

    def prep(x):
        x = x.reshape(N, 3, P)                           # contiguous, no transpose/cast
        if P_pad != P:
            x = jnp.pad(x, ((0, 0), (0, 0), (0, P_pad - P)))
        return x.reshape(N, 3, R8, _LANE)

    p = prep(pred)
    t = prep(target)

    # Row-tile size: as large as possible (amortizes the ~600-cycle per-step
    # overhead) but shrunk if that would leave too few grid steps to shard
    # across TensorCores (v7x megacore). Working set at TR=1024 (f32):
    # 2 inputs x 2 buffers x 1.5 MiB = 6 MiB -> fine even on v7x's 64 MiB VMEM.
    TR = min(max_rows_per_tile, R8)                      # multiple of 8
    RB = pl.cdiv(R8, TR)
    min_steps = 8
    if N * RB < min_steps and TR > 256:
        want_rb = pl.cdiv(min_steps, N)
        TR = max(256, pl.cdiv(pl.cdiv(R8, want_rb), _SUB) * _SUB)
        RB = pl.cdiv(R8, TR)

    needs_mask = (RB * TR * _LANE != P)                  # any padded/OOB positions?

    kernel = functools.partial(
        _color_loss_kernel,
        tile_rows=TR, chunk=_SUB, valid_pixels=P, needs_mask=needs_mask)

    in_spec = pl.BlockSpec((1, 3, TR, _LANE), lambda n, rb: (n, 0, rb, 0))
    out_spec = pl.BlockSpec((1, 1, 3, _SUB, _LANE), lambda n, rb: (n, rb, 0, 0, 0))

    out_bytes = N * RB * 3 * _SUB * _LANE * 4
    cost = pl.CostEstimate(
        flops=220 * N * P,                               # ~110 VPU ops / pixel / image
        transcendentals=12 * N * P,                      # 6 pow (exp+log) per pixel pair
        bytes_accessed=p.size * p.dtype.itemsize + t.size * t.dtype.itemsize + out_bytes,
    )

    parts = pl.pallas_call(
        kernel,
        grid=(N, RB),
        in_specs=[in_spec, in_spec],
        out_specs=out_spec,
        out_shape=jax.ShapeDtypeStruct((N, RB, 3, _SUB, _LANE), jnp.float32),
        compiler_params=pltpu.CompilerParams(
            dimension_semantics=("parallel", "parallel"),
            vmem_limit_bytes=32 * 1024 * 1024,
        ),
        cost_estimate=cost,
    )(p, t)

    # Tiny final reduction + the deferred affine scales / means in plain JAX.
    sums = jnp.sum(parts, axis=(0, 1, 3, 4))             # [sum|dfy|, sum|d(fx-fy)|, sum|d(fy-fz)|]
    n_pix = N * H * W
    l_loss = 1.16 * sums[0] / n_pix                      # mean over (N,1,H,W) of |dL/100|
    ab_loss = ((500.0 / 255.0) * sums[1] + (200.0 / 255.0) * sums[2]) / (2.0 * n_pix)
    return l_loss + 0.5 * ab_loss


if __name__ == "__main__":
    key = jax.random.PRNGKey(0)
    k1, k2 = jax.random.split(key)
    N, C, H, W = 2, 3, 16, 16
    # Inputs in [-1, 1], like tanh-normalized images.
    pred = jax.random.uniform(k1, (N, C, H, W), jnp.float32, -1.0, 1.0)
    target = jax.random.uniform(k2, (N, C, H, W), jnp.float32, -1.0, 1.0)

    loss = jax.jit(color_loss)(pred, target)
    jax.block_until_ready(loss)
    print("KERNEL_OK")
</pallas_src>

<mosaic_0001>
module attributes {stable_mosaic.version = 11 : i64} {
  func.func @_color_loss_kernel(%arg0: i32, %arg1: i32, %arg2: memref<1x3x8x128xf32, #tpu.memory_space<vmem>>, %arg3: memref<1x3x8x128xf32, #tpu.memory_space<vmem>>, %arg4: memref<1x1x3x8x128xf32, #tpu.memory_space<vmem>>) attributes {dimension_semantics = [#tpu.dimension_semantics<parallel>, #tpu.dimension_semantics<parallel>], iteration_bounds = array<i64: 2, 1>, scalar_prefetch = 0 : i64, scratch_operands = 0 : i64, tpu.core_type = #tpu.core_type<tc>, window_params = [{transform_indices = @transform_0, window_bounds = array<i64: 1, 3, 8, 128>}, {transform_indices = @transform_1, window_bounds = array<i64: 1, 3, 8, 128>}, {transform_indices = @transform_2, window_bounds = array<i64: 1, 1, 3, 8, 128>}]} {
    %0 = tpu.iota {dimensions = array<i32: 0>} : vector<8x128xi32>
    %1 = tpu.iota {dimensions = array<i32: 1>} : vector<8x128xi32>
    %c128_i32 = arith.constant 128 : i32
    %2 = vector.broadcast %c128_i32 : i32 to vector<8x128xi32>
    %3 = arith.muli %0, %2 : vector<8x128xi32>
    %4 = arith.addi %3, %1 : vector<8x128xi32>
    %c1024_i32 = arith.constant 1024 : i32
    %5 = arith.muli %arg1, %c1024_i32 : i32
    %cst = arith.constant 0.000000e+00 : f32
    %6 = vector.broadcast %cst : f32 to vector<8x128xf32>
    %c0_i32 = arith.constant 0 : i32
    %c8_i32 = arith.constant 8 : i32
    %7 = arith.muli %c0_i32, %c8_i32 : i32
    %8 = tpu.assume_multiple %7, 8 : i32
    %c0 = arith.constant 0 : index
    %c0_0 = arith.constant 0 : index
    %9 = arith.index_cast %8 : i32 to index
    %c0_1 = arith.constant 0 : index
    %10 = vector.load %arg2[%c0, %c0_0, %9, %c0_1] : memref<1x3x8x128xf32, #tpu.memory_space<vmem>>, vector<1x1x8x128xf32>
    %11 = vector.shape_cast %10 : vector<1x1x8x128xf32> to vector<8x128xf32>
    %c0_2 = arith.constant 0 : index
    %c1 = arith.constant 1 : index
    %12 = arith.index_cast %8 : i32 to index
    %c0_3 = arith.constant 0 : index
    %13 = vector.load %arg2[%c0_2, %c1, %12, %c0_3] : memref<1x3x8x128xf32, #tpu.memory_space<vmem>>, vector<1x1x8x128xf32>
    %14 = vector.shape_cast %13 : vector<1x1x8x128xf32> to vector<8x128xf32>
    %c0_4 = arith.constant 0 : index
    %c2 = arith.constant 2 : index
    %15 = arith.index_cast %8 : i32 to index
    %c0_5 = arith.constant 0 : index
    %16 = vector.load %arg2[%c0_4, %c2, %15, %c0_5] : memref<1x3x8x128xf32, #tpu.memory_space<vmem>>, vector<1x1x8x128xf32>
    %17 = vector.shape_cast %16 : vector<1x1x8x128xf32> to vector<8x128xf32>
    %cst_6 = arith.constant 1.000000e+00 : f32
    %18 = vector.broadcast %cst_6 : f32 to vector<8x128xf32>
    %19 = arith.addf %11, %18 : vector<8x128xf32>
    %cst_7 = arith.constant 5.000000e-01 : f32
    %20 = vector.broadcast %cst_7 : f32 to vector<8x128xf32>
    %21 = arith.mulf %19, %20 : vector<8x128xf32>
    %cst_8 = arith.constant 1.000000e+00 : f32
    %22 = vector.broadcast %cst_8 : f32 to vector<8x128xf32>
    %23 = arith.addf %14, %22 : vector<8x128xf32>
    %cst_9 = arith.constant 5.000000e-01 : f32
    %24 = vector.broadcast %cst_9 : f32 to vector<8x128xf32>
    %25 = arith.mulf %23, %24 : vector<8x128xf32>
    %cst_10 = arith.constant 1.000000e+00 : f32
    %26 = vector.broadcast %cst_10 : f32 to vector<8x128xf32>
    %27 = arith.addf %17, %26 : vector<8x128xf32>
    %cst_11 = arith.constant 5.000000e-01 : f32
    %28 = vector.broadcast %cst_11 : f32 to vector<8x128xf32>
    %29 = arith.mulf %27, %28 : vector<8x128xf32>
    %cst_12 = arith.constant 5.500000e-02 : f32
    %30 = vector.broadcast %cst_12 : f32 to vector<8x128xf32>
    %31 = arith.addf %21, %30 : vector<8x128xf32>
    %cst_13 = arith.constant 0.947867274 : f32
    %32 = vector.broadcast %cst_13 : f32 to vector<8x128xf32>
    %33 = arith.mulf %31, %32 : vector<8x128xf32>
    %cst_14 = arith.constant 0.000000e+00 : f32
    %34 = vector.broadcast %cst_14 : f32 to vector<8x128xf32>
    %35 = arith.maximumf %33, %34 : vector<8x128xf32>
    %cst_15 = arith.constant 4.045000e-02 : f32
    %36 = vector.broadcast %cst_15 : f32 to vector<8x128xf32>
    %37 = arith.cmpf ogt, %21, %36 : vector<8x128xf32>
    %cst_16 = arith.constant 2.400000e+00 : f32
    %38 = vector.broadcast %cst_16 : f32 to vector<8x128xf32>
    %39 = math.powf %35, %38 : vector<8x128xf32>
    %cst_17 = arith.constant 0.0773993805 : f32
    %40 = vector.broadcast %cst_17 : f32 to vector<8x128xf32>
    %41 = arith.mulf %21, %40 : vector<8x128xf32>
    %42 = arith.select %37, %39, %41 : vector<8x128xi1>, vector<8x128xf32>
    %cst_18 = arith.constant 5.500000e-02 : f32
    %43 = vector.broadcast %cst_18 : f32 to vector<8x128xf32>
    %44 = arith.addf %25, %43 : vector<8x128xf32>
    %cst_19 = arith.constant 0.947867274 : f32
    %45 = vector.broadcast %cst_19 : f32 to vector<8x128xf32>
    %46 = arith.mulf %44, %45 : vector<8x128xf32>
    %cst_20 = arith.constant 0.000000e+00 : f32
    %47 = vector.broadcast %cst_20 : f32 to vector<8x128xf32>
    %48 = arith.maximumf %46, %47 : vector<8x128xf32>
    %cst_21 = arith.constant 4.045000e-02 : f32
    %49 = vector.broadcast %cst_21 : f32 to vector<8x128xf32>
    %50 = arith.cmpf ogt, %25, %49 : vector<8x128xf32>
    %cst_22 = arith.constant 2.400000e+00 : f32
    %51 = vector.broadcast %cst_22 : f32 to vector<8x128xf32>
    %52 = math.powf %48, %51 : vector<8x128xf32>
    %cst_23 = arith.constant 0.0773993805 : f32
    %53 = vector.broadcast %cst_23 : f32 to vector<8x128xf32>
    %54 = arith.mulf %25, %53 : vector<8x128xf32>
    %55 = arith.select %50, %52, %54 : vector<8x128xi1>, vector<8x128xf32>
    %cst_24 = arith.constant 5.500000e-02 : f32
    %56 = vector.broadcast %cst_24 : f32 to vector<8x128xf32>
    %57 = arith.addf %29, %56 : vector<8x128xf32>
    %cst_25 = arith.constant 0.947867274 : f32
    %58 = vector.broadcast %cst_25 : f32 to vector<8x128xf32>
    %59 = arith.mulf %57, %58 : vector<8x128xf32>
    %cst_26 = arith.constant 0.000000e+00 : f32
    %60 = vector.broadcast %cst_26 : f32 to vector<8x128xf32>
    %61 = arith.maximumf %59, %60 : vector<8x128xf32>
    %cst_27 = arith.constant 4.045000e-02 : f32
    %62 = vector.broadcast %cst_27 : f32 to vector<8x128xf32>
    %63 = arith.cmpf ogt, %29, %62 : vector<8x128xf32>
    %cst_28 = arith.constant 2.400000e+00 : f32
    %64 = vector.broadcast %cst_28 : f32 to vector<8x128xf32>
    %65 = math.powf %61, %64 : vector<8x128xf32>
    %cst_29 = arith.constant 0.0773993805 : f32
    %66 = vector.broadcast %cst_29 : f32 to vector<8x128xf32>
    %67 = arith.mulf %29, %66 : vector<8x128xf32>
    %68 = arith.select %63, %65, %67 : vector<8x128xi1>, vector<8x128xf32>
    %cst_30 = arith.constant 0.433946371 : f32
    %69 = vector.broadcast %cst_30 : f32 to vector<8x128xf32>
    %70 = arith.mulf %69, %42 : vector<8x128xf32>
    %cst_31 = arith.constant 0.376213878 : f32
    %71 = vector.broadcast %cst_31 : f32 to vector<8x128xf32>
    %72 = arith.mulf %71, %55 : vector<8x128xf32>
    %73 = arith.addf %70, %72 : vector<8x128xf32>
    %cst_32 = arith.constant 0.189825028 : f32
    %74 = vector.broadcast %cst_32 : f32 to vector<8x128xf32>
    %75 = arith.mulf %74, %68 : vector<8x128xf32>
    %76 = arith.addf %73, %75 : vector<8x128xf32>
    %cst_33 = arith.constant 2.126710e-01 : f32
    %77 = vector.broadcast %cst_33 : f32 to vector<8x128xf32>
    %78 = arith.mulf %77, %42 : vector<8x128xf32>
    %cst_34 = arith.constant 7.151600e-01 : f32
    %79 = vector.broadcast %cst_34 : f32 to vector<8x128xf32>
    %80 = arith.mulf %79, %55 : vector<8x128xf32>
    %81 = arith.addf %78, %80 : vector<8x128xf32>
    %cst_35 = arith.constant 7.216900e-02 : f32
    %82 = vector.broadcast %cst_35 : f32 to vector<8x128xf32>
    %83 = arith.mulf %82, %68 : vector<8x128xf32>
    %84 = arith.addf %81, %83 : vector<8x128xf32>
    %cst_36 = arith.constant 0.0177566744 : f32
    %85 = vector.broadcast %cst_36 : f32 to vector<8x128xf32>
    %86 = arith.mulf %85, %42 : vector<8x128xf32>
    %cst_37 = arith.constant 0.109468877 : f32
    %87 = vector.broadcast %cst_37 : f32 to vector<8x128xf32>
    %88 = arith.mulf %87, %55 : vector<8x128xf32>
    %89 = arith.addf %86, %88 : vector<8x128xf32>
    %cst_38 = arith.constant 0.872704625 : f32
    %90 = vector.broadcast %cst_38 : f32 to vector<8x128xf32>
    %91 = arith.mulf %90, %68 : vector<8x128xf32>
    %92 = arith.addf %89, %91 : vector<8x128xf32>
    %cst_39 = arith.constant 8.856000e-03 : f32
    %93 = vector.broadcast %cst_39 : f32 to vector<8x128xf32>
    %94 = arith.maximumf %76, %93 : vector<8x128xf32>
    %95 = tpu.bitcast %94 : vector<8x128xf32> -> vector<8x128xi32>
    %96 = arith.sitofp %95 : vector<8x128xi32> to vector<8x128xf32>
    %cst_40 = arith.constant 0.333333343 : f32
    %97 = vector.broadcast %cst_40 : f32 to vector<8x128xf32>
    %98 = arith.mulf %96, %97 : vector<8x128xf32>
    %cst_41 = arith.constant 1.4199671E+9 : f32
    %99 = vector.broadcast %cst_41 : f32 to vector<8x128xf32>
    %100 = arith.subf %99, %98 : vector<8x128xf32>
    %101 = arith.fptosi %100 : vector<8x128xf32> to vector<8x128xi32>
    %102 = tpu.bitcast %101 : vector<8x128xi32> -> vector<8x128xf32>
    %cst_42 = arith.constant 0.333333343 : f32
    %103 = vector.broadcast %cst_42 : f32 to vector<8x128xf32>
    %104 = arith.mulf %94, %103 : vector<8x128xf32>
    %105 = arith.mulf %102, %102 : vector<8x128xf32>
    %106 = arith.mulf %105, %102 : vector<8x128xf32>
    %107 = arith.mulf %104, %106 : vector<8x128xf32>
    %cst_43 = arith.constant 1.33333337 : f32
    %108 = vector.broadcast %cst_43 : f32 to vector<8x128xf32>
    %109 = arith.subf %108, %107 : vector<8x128xf32>
    %110 = arith.mulf %102, %109 : vector<8x128xf32>
    %111 = arith.mulf %110, %110 : vector<8x128xf32>
    %112 = arith.mulf %111, %110 : vector<8x128xf32>
    %113 = arith.mulf %104, %112 : vector<8x128xf32>
    %cst_44 = arith.constant 1.33333337 : f32
    %114 = vector.broadcast %cst_44 : f32 to vector<8x128xf32>
    %115 = arith.subf %114, %113 : vector<8x128xf32>
    %116 = arith.mulf %110, %115 : vector<8x128xf32>
    %117 = arith.mulf %94, %116 : vector<8x128xf32>
    %118 = arith.mulf %117, %116 : vector<8x128xf32>
    %cst_45 = arith.constant 8.856000e-03 : f32
    %119 = vector.broadcast %cst_45 : f32 to vector<8x128xf32>
    %120 = arith.cmpf ogt, %76, %119 : vector<8x128xf32>
    %cst_46 = arith.constant 7.787000e+00 : f32
    %121 = vector.broadcast %cst_46 : f32 to vector<8x128xf32>
    %122 = arith.mulf %121, %76 : vector<8x128xf32>
    %cst_47 = arith.constant 0.137931034 : f32
    %123 = vector.broadcast %cst_47 : f32 to vector<8x128xf32>
    %124 = arith.addf %122, %123 : vector<8x128xf32>
    %125 = arith.select %120, %118, %124 : vector<8x128xi1>, vector<8x128xf32>
    %cst_48 = arith.constant 8.856000e-03 : f32
    %126 = vector.broadcast %cst_48 : f32 to vector<8x128xf32>
    %127 = arith.maximumf %84, %126 : vector<8x128xf32>
    %128 = tpu.bitcast %127 : vector<8x128xf32> -> vector<8x128xi32>
    %129 = arith.sitofp %128 : vector<8x128xi32> to vector<8x128xf32>
    %cst_49 = arith.constant 0.333333343 : f32
    %130 = vector.broadcast %cst_49 : f32 to vector<8x128xf32>
    %131 = arith.mulf %129, %130 : vector<8x128xf32>
    %cst_50 = arith.constant 1.4199671E+9 : f32
    %132 = vector.broadcast %cst_50 : f32 to vector<8x128xf32>
    %133 = arith.subf %132, %131 : vector<8x128xf32>
    %134 = arith.fptosi %133 : vector<8x128xf32> to vector<8x128xi32>
    %135 = tpu.bitcast %134 : vector<8x128xi32> -> vector<8x128xf32>
    %cst_51 = arith.constant 0.333333343 : f32
    %136 = vector.broadcast %cst_51 : f32 to vector<8x128xf32>
    %137 = arith.mulf %127, %136 : vector<8x128xf32>
    %138 = arith.mulf %135, %135 : vector<8x128xf32>
    %139 = arith.mulf %138, %135 : vector<8x128xf32>
    %140 = arith.mulf %137, %139 : vector<8x128xf32>
    %cst_52 = arith.constant 1.33333337 : f32
    %141 = vector.broadcast %cst_52 : f32 to vector<8x128xf32>
    %142 = arith.subf %141, %140 : vector<8x128xf32>
    %143 = arith.mulf %135, %142 : vector<8x128xf32>
    %144 = arith.mulf %143, %143 : vector<8x128xf32>
    %145 = arith.mulf %144, %143 : vector<8x128xf32>
    %146 = arith.mulf %137, %145 : vector<8x128xf32>
    %cst_53 = arith.constant 1.33333337 : f32
    %147 = vector.broadcast %cst_53 : f32 to vector<8x128xf32>
    %148 = arith.subf %147, %146 : vector<8x128xf32>
    %149 = arith.mulf %143, %148 : vector<8x128xf32>
    %150 = arith.mulf %127, %149 : vector<8x128xf32>
    %151 = arith.mulf %150, %149 : vector<8x128xf32>
    %cst_54 = arith.constant 8.856000e-03 : f32
    %152 = vector.broadcast %cst_54 : f32 to vector<8x128xf32>
    %153 = arith.cmpf ogt, %84, %152 : vector<8x128xf32>
    %cst_55 = arith.constant 7.787000e+00 : f32
    %154 = vector.broadcast %cst_55 : f32 to vector<8x128xf32>
    %155 = arith.mulf %154, %84 : vector<8x128xf32>
    %cst_56 = arith.constant 0.137931034 : f32
    %156 = vector.broadcast %cst_56 : f32 to vector<8x128xf32>
    %157 = arith.addf %155, %156 : vector<8x128xf32>
    %158 = arith.select %153, %151, %157 : vector<8x128xi1>, vector<8x128xf32>
    %cst_57 = arith.constant 8.856000e-03 : f32
    %159 = vector.broadcast %cst_57 : f32 to vector<8x128xf32>
    %160 = arith.maximumf %92, %159 : vector<8x128xf32>
    %161 = tpu.bitcast %160 : vector<8x128xf32> -> vector<8x128xi32>
    %162 = arith.sitofp %161 : vector<8x128xi32> to vector<8x128xf32>
    %cst_58 = arith.constant 0.333333343 : f32
    %163 = vector.broadcast %cst_58 : f32 to vector<8x128xf32>
    %164 = arith.mulf %162, %163 : vector<8x128xf32>
    %cst_59 = arith.constant 1.4199671E+9 : f32
    %165 = vector.broadcast %cst_59 : f32 to vector<8x128xf32>
    %166 = arith.subf %165, %164 : vector<8x128xf32>
    %167 = arith.fptosi %166 : vector<8x128xf32> to vector<8x128xi32>
    %168 = tpu.bitcast %167 : vector<8x128xi32> -> vector<8x128xf32>
    %cst_60 = arith.constant 0.333333343 : f32
    %169 = vector.broadcast %cst_60 : f32 to vector<8x128xf32>
    %170 = arith.mulf %160, %169 : vector<8x128xf32>
    %171 = arith.mulf %168, %168 : vector<8x128xf32>
    %172 = arith.mulf %171, %168 : vector<8x128xf32>
    %173 = arith.mulf %170, %172 : vector<8x128xf32>
    %cst_61 = arith.constant 1.33333337 : f32
    %174 = vector.broadcast %cst_61 : f32 to vector<8x128xf32>
    %175 = arith.subf %174, %173 : vector<8x128xf32>
    %176 = arith.mulf %168, %175 : vector<8x128xf32>
    %177 = arith.mulf %176, %176 : vector<8x128xf32>
    %178 = arith.mulf %177, %176 : vector<8x128xf32>
    %179 = arith.mulf %170, %178 : vector<8x128xf32>
    %cst_62 = arith.constant 1.33333337 : f32
    %180 = vector.broadcast %cst_62 : f32 to vector<8x128xf32>
    %181 = arith.subf %180, %179 : vector<8x128xf32>
    %182 = arith.mulf %176, %181 : vector<8x128xf32>
    %183 = arith.mulf %160, %182 : vector<8x128xf32>
    %184 = arith.mulf %183, %182 : vector<8x128xf32>
    %cst_63 = arith.constant 8.856000e-03 : f32
    %185 = vector.broadcast %cst_63 : f32 to vector<8x128xf32>
    %186 = arith.cmpf ogt, %92, %185 : vector<8x128xf32>
    %cst_64 = arith.constant 7.787000e+00 : f32
    %187 = vector.broadcast %cst_64 : f32 to vector<8x128xf32>
    %188 = arith.mulf %187, %92 : vector<8x128xf32>
    %cst_65 = arith.constant 0.137931034 : f32
    %189 = vector.broadcast %cst_65 : f32 to vector<8x128xf32>
    %190 = arith.addf %188, %189 : vector<8x128xf32>
    %191 = arith.select %186, %184, %190 : vector<8x128xi1>, vector<8x128xf32>
    %c0_66 = arith.constant 0 : index
    %c0_67 = arith.constant 0 : index
    %192 = arith.index_cast %8 : i32 to index
    %c0_68 = arith.constant 0 : index
    %193 = vector.load %arg3[%c0_66, %c0_67, %192, %c0_68] : memref<1x3x8x128xf32, #tpu.memory_space<vmem>>, vector<1x1x8x128xf32>
    %194 = vector.shape_cast %193 : vector<1x1x8x128xf32> to vector<8x128xf32>
    %c0_69 = arith.constant 0 : index
    %c1_70 = arith.constant 1 : index
    %195 = arith.index_cast %8 : i32 to index
    %c0_71 = arith.constant 0 : index
    %196 = vector.load %arg3[%c0_69, %c1_70, %195, %c0_71] : memref<1x3x8x128xf32, #tpu.memory_space<vmem>>, vector<1x1x8x128xf32>
    %197 = vector.shape_cast %196 : vector<1x1x8x128xf32> to vector<8x128xf32>
    %c0_72 = arith.constant 0 : index
    %c2_73 = arith.constant 2 : index
    %198 = arith.index_cast %8 : i32 to index
    %c0_74 = arith.constant 0 : index
    %199 = vector.load %arg3[%c0_72, %c2_73, %198, %c0_74] : memref<1x3x8x128xf32, #tpu.memory_space<vmem>>, vector<1x1x8x128xf32>
    %200 = vector.shape_cast %199 : vector<1x1x8x128xf32> to vector<8x128xf32>
    %cst_75 = arith.constant 1.000000e+00 : f32
    %201 = vector.broadcast %cst_75 : f32 to vector<8x128xf32>
    %202 = arith.addf %194, %201 : vector<8x128xf32>
    %cst_76 = arith.constant 5.000000e-01 : f32
    %203 = vector.broadcast %cst_76 : f32 to vector<8x128xf32>
    %204 = arith.mulf %202, %203 : vector<8x128xf32>
    %cst_77 = arith.constant 1.000000e+00 : f32
    %205 = vector.broadcast %cst_77 : f32 to vector<8x128xf32>
    %206 = arith.addf %197, %205 : vector<8x128xf32>
    %cst_78 = arith.constant 5.000000e-01 : f32
    %207 = vector.broadcast %cst_78 : f32 to vector<8x128xf32>
    %208 = arith.mulf %206, %207 : vector<8x128xf32>
    %cst_79 = arith.constant 1.000000e+00 : f32
    %209 = vector.broadcast %cst_79 : f32 to vector<8x128xf32>
    %210 = arith.addf %200, %209 : vector<8x128xf32>
    %cst_80 = arith.constant 5.000000e-01 : f32
    %211 = vector.broadcast %cst_80 : f32 to vector<8x128xf32>
    %212 = arith.mulf %210, %211 : vector<8x128xf32>
    %cst_81 = arith.constant 5.500000e-02 : f32
    %213 = vector.broadcast %cst_81 : f32 to vector<8x128xf32>
    %214 = arith.addf %204, %213 : vector<8x128xf32>
    %cst_82 = arith.constant 0.947867274 : f32
    %215 = vector.broadcast %cst_82 : f32 to vector<8x128xf32>
    %216 = arith.mulf %214, %215 : vector<8x128xf32>
    %cst_83 = arith.constant 0.000000e+00 : f32
    %217 = vector.broadcast %cst_83 : f32 to vector<8x128xf32>
    %218 = arith.maximumf %216, %217 : vector<8x128xf32>
    %cst_84 = arith.constant 4.045000e-02 : f32
    %219 = vector.broadcast %cst_84 : f32 to vector<8x128xf32>
    %220 = arith.cmpf ogt, %204, %219 : vector<8x128xf32>
    %cst_85 = arith.constant 2.400000e+00 : f32
    %221 = vector.broadcast %cst_85 : f32 to vector<8x128xf32>
    %222 = math.powf %218, %221 : vector<8x128xf32>
    %cst_86 = arith.constant 0.0773993805 : f32
    %223 = vector.broadcast %cst_86 : f32 to vector<8x128xf32>
    %224 = arith.mulf %204, %223 : vector<8x128xf32>
    %225 = arith.select %220, %222, %224 : vector<8x128xi1>, vector<8x128xf32>
    %cst_87 = arith.constant 5.500000e-02 : f32
    %226 = vector.broadcast %cst_87 : f32 to vector<8x128xf32>
    %227 = arith.addf %208, %226 : vector<8x128xf32>
    %cst_88 = arith.constant 0.947867274 : f32
    %228 = vector.broadcast %cst_88 : f32 to vector<8x128xf32>
    %229 = arith.mulf %227, %228 : vector<8x128xf32>
    %cst_89 = arith.constant 0.000000e+00 : f32
    %230 = vector.broadcast %cst_89 : f32 to vector<8x128xf32>
    %231 = arith.maximumf %229, %230 : vector<8x128xf32>
    %cst_90 = arith.constant 4.045000e-02 : f32
    %232 = vector.broadcast %cst_90 : f32 to vector<8x128xf32>
    %233 = arith.cmpf ogt, %208, %232 : vector<8x128xf32>
    %cst_91 = arith.constant 2.400000e+00 : f32
    %234 = vector.broadcast %cst_91 : f32 to vector<8x128xf32>
    %235 = math.powf %231, %234 : vector<8x128xf32>
    %cst_92 = arith.constant 0.0773993805 : f32
    %236 = vector.broadcast %cst_92 : f32 to vector<8x128xf32>
    %237 = arith.mulf %208, %236 : vector<8x128xf32>
    %238 = arith.select %233, %235, %237 : vector<8x128xi1>, vector<8x128xf32>
    %cst_93 = arith.constant 5.500000e-02 : f32
    %239 = vector.broadcast %cst_93 : f32 to vector<8x128xf32>
    %240 = arith.addf %212, %239 : vector<8x128xf32>
    %cst_94 = arith.constant 0.947867274 : f32
    %241 = vector.broadcast %cst_94 : f32 to vector<8x128xf32>
    %242 = arith.mulf %240, %241 : vector<8x128xf32>
    %cst_95 = arith.constant 0.000000e+00 : f32
    %243 = vector.broadcast %cst_95 : f32 to vector<8x128xf32>
    %244 = arith.maximumf %242, %243 : vector<8x128xf32>
    %cst_96 = arith.constant 4.045000e-02 : f32
    %245 = vector.broadcast %cst_96 : f32 to vector<8x128xf32>
    %246 = arith.cmpf ogt, %212, %245 : vector<8x128xf32>
    %cst_97 = arith.constant 2.400000e+00 : f32
    %247 = vector.broadcast %cst_97 : f32 to vector<8x128xf32>
    %248 = math.powf %244, %247 : vector<8x128xf32>
    %cst_98 = arith.constant 0.0773993805 : f32
    %249 = vector.broadcast %cst_98 : f32 to vector<8x128xf32>
    %250 = arith.mulf %212, %249 : vector<8x128xf32>
    %251 = arith.select %246, %248, %250 : vector<8x128xi1>, vector<8x128xf32>
    %cst_99 = arith.constant 0.433946371 : f32
    %252 = vector.broadcast %cst_99 : f32 to vector<8x128xf32>
    %253 = arith.mulf %252, %225 : vector<8x128xf32>
    %cst_100 = arith.constant 0.376213878 : f32
    %254 = vector.broadcast %cst_100 : f32 to vector<8x128xf32>
    %255 = arith.mulf %254, %238 : vector<8x128xf32>
    %256 = arith.addf %253, %255 : vector<8x128xf32>
    %cst_101 = arith.constant 0.189825028 : f32
    %257 = vector.broadcast %cst_101 : f32 to vector<8x128xf32>
    %258 = arith.mulf %257, %251 : vector<8x128xf32>
    %259 = arith.addf %256, %258 : vector<8x128xf32>
    %cst_102 = arith.constant 2.126710e-01 : f32
    %260 = vector.broadcast %cst_102 : f32 to vector<8x128xf32>
    %261 = arith.mulf %260, %225 : vector<8x128xf32>
    %cst_103 = arith.constant 7.151600e-01 : f32
    %262 = vector.broadcast %cst_103 : f32 to vector<8x128xf32>
    %263 = arith.mulf %262, %238 : vector<8x128xf32>
    %264 = arith.addf %261, %263 : vector<8x128xf32>
    %cst_104 = arith.constant 7.216900e-02 : f32
    %265 = vector.broadcast %cst_104 : f32 to vector<8x128xf32>
    %266 = arith.mulf %265, %251 : vector<8x128xf32>
    %267 = arith.addf %264, %266 : vector<8x128xf32>
    %cst_105 = arith.constant 0.0177566744 : f32
    %268 = vector.broadcast %cst_105 : f32 to vector<8x128xf32>
    %269 = arith.mulf %268, %225 : vector<8x128xf32>
    %cst_106 = arith.constant 0.109468877 : f32
    %270 = vector.broadcast %cst_106 : f32 to vector<8x128xf32>
    %271 = arith.mulf %270, %238 : vector<8x128xf32>
    %272 = arith.addf %269, %271 : vector<8x128xf32>
    %cst_107 = arith.constant 0.872704625 : f32
    %273 = vector.broadcast %cst_107 : f32 to vector<8x128xf32>
    %274 = arith.mulf %273, %251 : vector<8x128xf32>
    %275 = arith.addf %272, %274 : vector<8x128xf32>
    %cst_108 = arith.constant 8.856000e-03 : f32
    %276 = vector.broadcast %cst_108 : f32 to vector<8x128xf32>
    %277 = arith.maximumf %259, %276 : vector<8x128xf32>
    %278 = tpu.bitcast %277 : vector<8x128xf32> -> vector<8x128xi32>
    %279 = arith.sitofp %278 : vector<8x128xi32> to vector<8x128xf32>
    %cst_109 = arith.constant 0.333333343 : f32
    %280 = vector.broadcast %cst_109 : f32 to vector<8x128xf32>
    %281 = arith.mulf %279, %280 : vector<8x128xf32>
    %cst_110 = arith.constant 1.4199671E+9 : f32
    %282 = vector.broadcast %cst_110 : f32 to vector<8x128xf32>
    %283 = arith.subf %282, %281 : vector<8x128xf32>
    %284 = arith.fptosi %283 : vector<8x128xf32> to vector<8x128xi32>
    %285 = tpu.bitcast %284 : vector<8x128xi32> -> vector<8x128xf32>
    %cst_111 = arith.constant 0.333333343 : f32
    %286 = vector.broadcast %cst_111 : f32 to vector<8x128xf32>
    %287 = arith.mulf %277, %286 : vector<8x128xf32>
    %288 = arith.mulf %285, %285 : vector<8x128xf32>
    %289 = arith.mulf %288, %285 : vector<8x128xf32>
    %290 = arith.mulf %287, %289 : vector<8x128xf32>
    %cst_112 = arith.constant 1.33333337 : f32
    %291 = vector.broadcast %cst_112 : f32 to vector<8x128xf32>
    %292 = arith.subf %291, %290 : vector<8x128xf32>
    %293 = arith.mulf %285, %292 : vector<8x128xf32>
    %294 = arith.mulf %293, %293 : vector<8x128xf32>
    %295 = arith.mulf %294, %293 : vector<8x128xf32>
    %296 = arith.mulf %287, %295 : vector<8x128xf32>
    %cst_113 = arith.constant 1.33333337 : f32
    %297 = vector.broadcast %cst_113 : f32 to vector<8x128xf32>
    %298 = arith.subf %297, %296 : vector<8x128xf32>
    %299 = arith.mulf %293, %298 : vector<8x128xf32>
    %300 = arith.mulf %277, %299 : vector<8x128xf32>
    %301 = arith.mulf %300, %299 : vector<8x128xf32>
    %cst_114 = arith.constant 8.856000e-03 : f32
    %302 = vector.broadcast %cst_114 : f32 to vector<8x128xf32>
    %303 = arith.cmpf ogt, %259, %302 : vector<8x128xf32>
    %cst_115 = arith.constant 7.787000e+00 : f32
    %304 = vector.broadcast %cst_115 : f32 to vector<8x128xf32>
    %305 = arith.mulf %304, %259 : vector<8x128xf32>
    %cst_116 = arith.constant 0.137931034 : f32
    %306 = vector.broadcast %cst_116 : f32 to vector<8x128xf32>
    %307 = arith.addf %305, %306 : vector<8x128xf32>
    %308 = arith.select %303, %301, %307 : vector<8x128xi1>, vector<8x128xf32>
    %cst_117 = arith.constant 8.856000e-03 : f32
    %309 = vector.broadcast %cst_117 : f32 to vector<8x128xf32>
    %310 = arith.maximumf %267, %309 : vector<8x128xf32>
    %311 = tpu.bitcast %310 : vector<8x128xf32> -> vector<8x128xi32>
    %312 = arith.sitofp %311 : vector<8x128xi32> to vector<8x128xf32>
    %cst_118 = arith.constant 0.333333343 : f32
    %313 = vector.broadcast %cst_118 : f32 to vector<8x128xf32>
    %314 = arith.mulf %312, %313 : vector<8x128xf32>
    %cst_119 = arith.constant 1.4199671E+9 : f32
    %315 = vector.broadcast %cst_119 : f32 to vector<8x128xf32>
    %316 = arith.subf %315, %314 : vector<8x128xf32>
    %317 = arith.fptosi %316 : vector<8x128xf32> to vector<8x128xi32>
    %318 = tpu.bitcast %317 : vector<8x128xi32> -> vector<8x128xf32>
    %cst_120 = arith.constant 0.333333343 : f32
    %319 = vector.broadcast %cst_120 : f32 to vector<8x128xf32>
    %320 = arith.mulf %310, %319 : vector<8x128xf32>
    %321 = arith.mulf %318, %318 : vector<8x128xf32>
    %322 = arith.mulf %321, %318 : vector<8x128xf32>
    %323 = arith.mulf %320, %322 : vector<8x128xf32>
    %cst_121 = arith.constant 1.33333337 : f32
    %324 = vector.broadcast %cst_121 : f32 to vector<8x128xf32>
    %325 = arith.subf %324, %323 : vector<8x128xf32>
    %326 = arith.mulf %318, %325 : vector<8x128xf32>
    %327 = arith.mulf %326, %326 : vector<8x128xf32>
    %328 = arith.mulf %327, %326 : vector<8x128xf32>
    %329 = arith.mulf %320, %328 : vector<8x128xf32>
    %cst_122 = arith.constant 1.33333337 : f32
    %330 = vector.broadcast %cst_122 : f32 to vector<8x128xf32>
    %331 = arith.subf %330, %329 : vector<8x128xf32>
    %332 = arith.mulf %326, %331 : vector<8x128xf32>
    %333 = arith.mulf %310, %332 : vector<8x128xf32>
    %334 = arith.mulf %333, %332 : vector<8x128xf32>
    %cst_123 = arith.constant 8.856000e-03 : f32
    %335 = vector.broadcast %cst_123 : f32 to vector<8x128xf32>
    %336 = arith.cmpf ogt, %267, %335 : vector<8x128xf32>
    %cst_124 = arith.constant 7.787000e+00 : f32
    %337 = vector.broadcast %cst_124 : f32 to vector<8x128xf32>
    %338 = arith.mulf %337, %267 : vector<8x128xf32>
    %cst_125 = arith.constant 0.137931034 : f32
    %339 = vector.broadcast %cst_125 : f32 to vector<8x128xf32>
    %340 = arith.addf %338, %339 : vector<8x128xf32>
    %341 = arith.select %336, %334, %340 : vector<8x128xi1>, vector<8x128xf32>
    %cst_126 = arith.constant 8.856000e-03 : f32
    %342 = vector.broadcast %cst_126 : f32 to vector<8x128xf32>
    %343 = arith.maximumf %275, %342 : vector<8x128xf32>
    %344 = tpu.bitcast %343 : vector<8x128xf32> -> vector<8x128xi32>
    %345 = arith.sitofp %344 : vector<8x128xi32> to vector<8x128xf32>
    %cst_127 = arith.constant 0.333333343 : f32
    %346 = vector.broadcast %cst_127 : f32 to vector<8x128xf32>
    %347 = arith.mulf %345, %346 : vector<8x128xf32>
    %cst_128 = arith.constant 1.4199671E+9 : f32
    %348 = vector.broadcast %cst_128 : f32 to vector<8x128xf32>
    %349 = arith.subf %348, %347 : vector<8x128xf32>
    %350 = arith.fptosi %349 : vector<8x128xf32> to vector<8x128xi32>
    %351 = tpu.bitcast %350 : vector<8x128xi32> -> vector<8x128xf32>
    %cst_129 = arith.constant 0.333333343 : f32
    %352 = vector.broadcast %cst_129 : f32 to vector<8x128xf32>
    %353 = arith.mulf %343, %352 : vector<8x128xf32>
    %354 = arith.mulf %351, %351 : vector<8x128xf32>
    %355 = arith.mulf %354, %351 : vector<8x128xf32>
    %356 = arith.mulf %353, %355 : vector<8x128xf32>
    %cst_130 = arith.constant 1.33333337 : f32
    %357 = vector.broadcast %cst_130 : f32 to vector<8x128xf32>
    %358 = arith.subf %357, %356 : vector<8x128xf32>
    %359 = arith.mulf %351, %358 : vector<8x128xf32>
    %360 = arith.mulf %359, %359 : vector<8x128xf32>
    %361 = arith.mulf %360, %359 : vector<8x128xf32>
    %362 = arith.mulf %353, %361 : vector<8x128xf32>
    %cst_131 = arith.constant 1.33333337 : f32
    %363 = vector.broadcast %cst_131 : f32 to vector<8x128xf32>
    %364 = arith.subf %363, %362 : vector<8x128xf32>
    %365 = arith.mulf %359, %364 : vector<8x128xf32>
    %366 = arith.mulf %343, %365 : vector<8x128xf32>
    %367 = arith.mulf %366, %365 : vector<8x128xf32>
    %cst_132 = arith.constant 8.856000e-03 : f32
    %368 = vector.broadcast %cst_132 : f32 to vector<8x128xf32>
    %369 = arith.cmpf ogt, %275, %368 : vector<8x128xf32>
    %cst_133 = arith.constant 7.787000e+00 : f32
    %370 = vector.broadcast %cst_133 : f32 to vector<8x128xf32>
    %371 = arith.mulf %370, %275 : vector<8x128xf32>
    %cst_134 = arith.constant 0.137931034 : f32
    %372 = vector.broadcast %cst_134 : f32 to vector<8x128xf32>
    %373 = arith.addf %371, %372 : vector<8x128xf32>
    %374 = arith.select %369, %367, %373 : vector<8x128xi1>, vector<8x128xf32>
    %375 = arith.subf %158, %341 : vector<8x128xf32>
    %376 = math.absf %375 : vector<8x128xf32>
    %377 = arith.subf %125, %308 : vector<8x128xf32>
    %378 = arith.subf %377, %375 : vector<8x128xf32>
    %379 = math.absf %378 : vector<8x128xf32>
    %380 = arith.subf %191, %374 : vector<8x128xf32>
    %381 = arith.subf %375, %380 : vector<8x128xf32>
    %382 = math.absf %381 : vector<8x128xf32>
    %c128_i32_135 = arith.constant 128 : i32
    %383 = arith.muli %8, %c128_i32_135 : i32
    %384 = arith.addi %5, %383 : i32
    %385 = vector.broadcast %384 : i32 to vector<8x128xi32>
    %386 = arith.addi %385, %4 : vector<8x128xi32>
    %c256_i32 = arith.constant 256 : i32
    %387 = vector.broadcast %c256_i32 : i32 to vector<8x128xi32>
    %388 = arith.cmpi slt, %386, %387 : vector<8x128xi32>
    %cst_136 = arith.constant 0.000000e+00 : f32
    %389 = vector.broadcast %cst_136 : f32 to vector<8x128xf32>
    %390 = arith.select %388, %376, %389 : vector<8x128xi1>, vector<8x128xf32>
    %cst_137 = arith.constant 0.000000e+00 : f32
    %391 = vector.broadcast %cst_137 : f32 to vector<8x128xf32>
    %392 = arith.select %388, %379, %391 : vector<8x128xi1>, vector<8x128xf32>
    %cst_138 = arith.constant 0.000000e+00 : f32
    %393 = vector.broadcast %cst_138 : f32 to vector<8x128xf32>
    %394 = arith.select %388, %382, %393 : vector<8x128xi1>, vector<8x128xf32>
    %395 = arith.addf %6, %390 : vector<8x128xf32>
    %396 = arith.addf %6, %392 : vector<8x128xf32>
    %397 = arith.addf %6, %394 : vector<8x128xf32>
    %c1_i32 = arith.constant 1 : i32
    %c0_139 = arith.constant 0 : index
    %c0_140 = arith.constant 0 : index
    %c0_141 = arith.constant 0 : index
    %c0_142 = arith.constant 0 : index
    %c0_143 = arith.constant 0 : index
    %398 = vector.load %arg4[%c0_139, %c0_140, %c0_141, %c0_142, %c0_143] : memref<1x1x3x8x128xf32, #tpu.memory_space<vmem>>, vector<1x1x1x8x128xf32>
    %399 = vector.shape_cast %398 : vector<1x1x1x8x128xf32> to vector<8x128xf32>
    %400 = vector.shape_cast %395 : vector<8x128xf32> to vector<1x1x1x8x128xf32>
    tpu.vector_store %arg4[%c0_139, %c0_140, %c0_141, %c0_142, %c0_143], %400 {strides = array<i32>} : memref<1x1x3x8x128xf32, #tpu.memory_space<vmem>>, vector<1x1x1x8x128xf32>,
    %c0_144 = arith.constant 0 : index
    %c0_145 = arith.constant 0 : index
    %c1_146 = arith.constant 1 : index
    %c0_147 = arith.constant 0 : index
    %c0_148 = arith.constant 0 : index
    %401 = vector.load %arg4[%c0_144, %c0_145, %c1_146, %c0_147, %c0_148] : memref<1x1x3x8x128xf32, #tpu.memory_space<vmem>>, vector<1x1x1x8x128xf32>
    %402 = vector.shape_cast %401 : vector<1x1x1x8x128xf32> to vector<8x128xf32>
    %403 = vector.shape_cast %396 : vector<8x128xf32> to vector<1x1x1x8x128xf32>
    tpu.vector_store %arg4[%c0_144, %c0_145, %c1_146, %c0_147, %c0_148], %403 {strides = array<i32>} : memref<1x1x3x8x128xf32, #tpu.memory_space<vmem>>, vector<1x1x1x8x128xf32>,
    %c0_149 = arith.constant 0 : index
    %c0_150 = arith.constant 0 : index
    %c2_151 = arith.constant 2 : index
    %c0_152 = arith.constant 0 : index
    %c0_153 = arith.constant 0 : index
    %404 = vector.load %arg4[%c0_149, %c0_150, %c2_151, %c0_152, %c0_153] : memref<1x1x3x8x128xf32, #tpu.memory_space<vmem>>, vector<1x1x1x8x128xf32>
    %405 = vector.shape_cast %404 : vector<1x1x1x8x128xf32> to vector<8x128xf32>
    %406 = vector.shape_cast %397 : vector<8x128xf32> to vector<1x1x1x8x128xf32>
    tpu.vector_store %arg4[%c0_149, %c0_150, %c2_151, %c0_152, %c0_153], %406 {strides = array<i32>} : memref<1x1x3x8x128xf32, #tpu.memory_space<vmem>>, vector<1x1x1x8x128xf32>,
    return
  }
  func.func @transform_0(%arg0: i32, %arg1: i32) -> (i32, i32, i32, i32) {
    %c0_i32 = arith.constant 0 : i32
    %c0_i32_0 = arith.constant 0 : i32
    %c0_i32_1 = arith.constant 0 : i32
    return %arg0, %c0_i32, %arg1, %c0_i32_0 : i32, i32, i32, i32
  }
  func.func @transform_1(%arg0: i32, %arg1: i32) -> (i32, i32, i32, i32) {
    %c0_i32 = arith.constant 0 : i32
    %c0_i32_0 = arith.constant 0 : i32
    %c0_i32_1 = arith.constant 0 : i32
    return %arg0, %c0_i32, %arg1, %c0_i32_0 : i32, i32, i32, i32
  }
  func.func @transform_2(%arg0: i32, %arg1: i32) -> (i32, i32, i32, i32, i32) {
    %c0_i32 = arith.constant 0 : i32
    %c0_i32_0 = arith.constant 0 : i32
    %c0_i32_1 = arith.constant 0 : i32
    %c0_i32_2 = arith.constant 0 : i32
    return %arg0, %arg1, %c0_i32, %c0_i32_0, %c0_i32_1 : i32, i32, i32, i32, i32
  }
}

</mosaic_0001>

<bundles_post_ra>
// kernel: color_loss.1
= control target key start
LH: loop header
LB: loop body
LE: loop exit
PB: predicated region body
PF: predicated region fallthrough
CT: control target
= control target key end

     0   :  { %s1138_s9 = smov 0   ;;  %s1140_s10 = smov 0   ;;  %s1532_s0 = inlined_call_operand.vmem [shape: f32[2,3,8,128], index: 0, kind: input, shape index: {}]   ;;  %s1533_s1 = inlined_call_operand.vmem [shape: f32[2,3,8,128], index: 1, kind: input, shape index: {}]   ;;  %s1534_s2 = inlined_call_operand.vmem [shape: f32[2,1,3,8,128], index: 2, kind: output, shape index: {}]  }
   0x1   :  { %s1142_s11 = smov 0  }
   0x2 LB: > { %s24_s12 = sadd.s32 1, %s1117_s10  ;;  %p594_p0 = scmp.ge.s32.totalorder %s1121_s11, 1  ;;  %s1121_s11 = sphi %s1142_s11, %s12_s11   ;;  %s1117_s10 = sphi %s1140_s10, %s1536_s10   ;;  %s1113_s9 = sphi %s1138_s9, %s1535_s9  }
   0x3   : > { %p26_p1 = scmp.ge.s32.totalorder %s24_s12, 2  ;;  %p146_p2 = scmp.lt.s32.totalorder %s1121_s11, 3 }
   0x5   : > { %s1538_s12 = smov (%p26_p1, %s24_s12), 0  ;;  %p147_p3 = pnand %p594_p0, %p146_p2 }
   0x6   : > { %p183_p4 = scmp.lt.s32.totalorder (!%p147_p3), %s1113_s9, 1 }
   0x7   : > { %150 = sbr.rel (%p147_p3) target bundleno = 199 (0xc7), region = 28 }
   0xc   : > { %s1540_s9 = smov (!%p183_p4, %s1113_s9), 1 }
   0xd   : > { %s1156_s13 = smul.u32 24, %s1540_s9 }
   0xf   : > { %s190_s16 = scalar_lea.vmem %s1532_s0, %s1156_s13  ;;  %s1172_s19 = scalar_lea.vmem %s1533_s1, %s1156_s13 }
  0x10   : > { %v215_v0 = vld [vmem:[%s190_s16] sm:$0xff]  ;;  %v598_v1 = vld [vmem:[%s190_s16 + $0x8] sm:$0xff]  ;;  %v599_v2 = vld [vmem:[%s190_s16 + $0x10] sm:$0xff]  ;;  %s207_s22 = scalar_lea.vmem %s1534_s2, %s1156_s13 }
  0x11   : > { %v222_v3 = vadd.f32 1.0, %v215_v0  ;;  %v224_v4 = vadd.f32 1.0, %v598_v1  ;;  %v226_v5 = vadd.f32 1.0, %v599_v2  ;;  %v336_v15 = vld [vmem:[%s1172_s19] sm:$0xff]  ;;  %v600_v41 = vld [vmem:[%s1172_s19 + $0x8] sm:$0xff] }
  0x12   : > { %v341_v21 = vadd.f32 1.0, %v336_v15  ;;  %v343_v47 = vadd.f32 1.0, %v600_v41 }
  0x13   : > { %v1162_v6 = vmul.f32 0.5, %v222_v3  ;;  %v1164_v7 = vmul.f32 0.5, %v224_v4  ;;  %v1166_v8 = vmul.f32 0.5, %v226_v5 }
  0x14   : > { %v1196_v28 = vmul.f32 0.5, %v341_v21  ;;  %v1237_v61 = vmul.f32 0.5, %v343_v47 }
  0x15   : > { %v228_v9 = vadd.f32 0.055, %v1162_v6  ;;  %v235_v10 = vadd.f32 0.055, %v1164_v7  ;;  %v242_v11 = vadd.f32 0.055, %v1166_v8 }
  0x16   : > { %v347_v34 = vadd.f32 0.055, %v1196_v28 }
  0x17   : > { %v229_v12 = vmul.f32 0.9478673, %v228_v9  ;;  %v236_v13 = vmul.f32 0.9478673, %v235_v10  ;;  %v243_v14 = vmul.f32 0.9478673, %v242_v11 }
  0x18   : > { %v348_v42 = vmul.f32 0.9478673, %v347_v34 }
  0x19   : > { %v1178_v16 = vmax.f32 %v229_v12, 0.0  ;;  %v1180_v17 = vmax.f32 %v236_v13, 0.0  ;;  %v1182_v18 = vmax.f32 %v243_v14, 0.0  ;;  %v354_v14 = vadd.f32 0.055, %v1237_v61 }
  0x1a   : > { %v1230_v51 = vmax.f32 %v348_v42, 0.0 }
  0x1b   : > { %v1185_v19 = vand.u32 2147483647, %v1178_v16  ;;  %v1188_v20 = vand.u32 2147483647, %v1180_v17  ;;  %v1191_v22 = vand.u32 2147483647, %v1182_v18 }
  0x1c   : > { %v1240_v4 = vand.u32 2147483647, %v1230_v51 }
  0x1d   : > { %v617_v23 = vand.u32 8388607, %v1185_v19  ;;  %v688_v24 = vand.u32 8388607, %v1188_v20  ;;  %v759_v25 = vand.u32 8388607, %v1191_v22  ;;  %vm651_vm4 = vweird.f32 %v1185_v19 }
  0x1e   : > { %v613_v48 = vand.u32 2139095040, %v1185_v19  ;;  %v684_v54 = vand.u32 2139095040, %v1188_v20  ;;  %v755_v10 = vand.u32 2139095040, %v1191_v22  ;;  %vm722_vm5 = vweird.f32 %v1188_v20 }
  0x1f   : > { %v618_v26 = vor.u32 8388608, %v617_v23  ;;  %v689_v27 = vor.u32 8388608, %v688_v24  ;;  %v760_v31 = vor.u32 8388608, %v759_v25  ;;  %vm650_vm6 = vcmp.lt.f32.partialorder %v1185_v19, 0.0 }
  0x20   : > { %v614_v62 = vshrl.u32 %v613_v48, 23  ;;  %v685_v3 = vshrl.u32 %v684_v54, 23  ;;  %vm721_vm7 = vcmp.lt.f32.partialorder %v1188_v20, 0.0  ;;  %vm649_vm8 = vcmp.eq.f32.partialorder %v1185_v19, 0.0 }
  0x21   : > { %v620_v29 = vand.u32 8388607, %v618_v26  ;;  %v691_v30 = vand.u32 8388607, %v689_v27  ;;  %v762_v35 = vand.u32 8388607, %v760_v31  ;;  %vm793_vm9 = vweird.f32 %v1191_v22 }
  0x22   : > { %v676_v15 = vadd.s32 4294967169, %v614_v62  ;;  %v747_v26 = vadd.s32 4294967169, %v685_v3  ;;  %v845_v27 = vand.u32 8388607, %v1240_v4  ;;  %v756_v31 = vshrl.u32 %v755_v10, 23 }
  0x23   : > { %v1198_v32 = vor.u32 1065353216, %v620_v29  ;;  %v1200_v33 = vor.u32 1065353216, %v691_v30  ;;  %v1207_v38 = vor.u32 1065353216, %v762_v35  ;;  %vm720_vm10 = vcmp.eq.f32.partialorder %v1188_v20, 0.0 }
  0x24   : > { %vm648_vm11 = vcmp.eq.f32.partialorder %v1185_v19, 1.0  ;;  %vm792_vm12 = vcmp.lt.f32.partialorder %v1191_v22, 0.0  ;;  %vm719_vm13 = vcmp.eq.f32.partialorder %v1188_v20, 1.0  ;;  %vm791_vm15 = vcmp.eq.f32.partialorder %v1191_v22, 0.0 }
  0x25   : > { %vm622_vm0 = vcmp.ge.f32.partialorder %v1198_v32, 1.4142135  ;;  %v623_v36 = vmul.f32 0.5, %v1198_v32  ;;  %vm693_vm1 = vcmp.ge.f32.partialorder %v1200_v33, 1.4142135  ;;  %v694_v37 = vmul.f32 0.5, %v1200_v33 }
  0x26   : > { %vm764_vm2 = vcmp.ge.f32.partialorder %v1207_v38, 1.4142135  ;;  %v765_v45 = vmul.f32 0.5, %v1207_v38 }
  0x27   : > { %v624_v39 = vsel %vm622_vm0, %v623_v36, %v1198_v32  ;;  %v695_v40 = vsel %vm693_vm1, %v694_v37, %v1200_v33 }
  0x28   : > { %v1216_v43 = vadd.f32 -1.0, %v624_v39  ;;  %v1218_v44 = vadd.f32 -1.0, %v695_v40  ;;  %v766_v50 = vsel %vm764_vm2, %v765_v45, %v1207_v38  ;;  %v625_v39 = vadd.s32 1, %v676_v15 }
  0x29   : > { %v1233_v55 = vadd.f32 -1.0, %v766_v50  ;;  %v846_v50 = vor.u32 8388608, %v845_v27 }
  0x2a   : > { %v628_v46 = vmul.f32 %v1216_v43, %v1216_v43  ;;  %v699_v49 = vmul.f32 %v1218_v44, %v1218_v44 }
  0x2b   : > { %v770_v60 = vmul.f32 %v1233_v55, %v1233_v55  ;;  %v848_v3 = vand.u32 8388607, %v846_v50 }
  0x2c   : > { %v629_v52 = vmul.f32 0.12621109, %v628_v46  ;;  %v631_v53 = vmul.f32 -0.20706727, %v628_v46  ;;  %v700_v56 = vmul.f32 0.12621109, %v699_v49 }
  0x2d   : > { %v702_v57 = vmul.f32 -0.20706727, %v699_v49  ;;  %v771_v11 = vmul.f32 0.12621109, %v770_v60  ;;  %v773_v37 = vmul.f32 -0.20706727, %v770_v60 }
  0x2e   : > { %v630_v58 = vadd.f32 0.21545328, %v629_v52  ;;  %v632_v59 = vadd.f32 -0.23896284, %v631_v53  ;;  %v701_v63 = vadd.f32 0.21545328, %v700_v56 }
  0x2f   : > { %v703_v0 = vadd.f32 -0.23896284, %v702_v57  ;;  %v772_v34 = vadd.f32 0.21545328, %v771_v11  ;;  %v774_v48 = vadd.f32 -0.23896284, %v773_v37 }
  0x30   : > { %v633_v1 = vmul.f32 %v630_v58, %v628_v46  ;;  %v635_v2 = vmul.f32 %v632_v59, %v628_v46  ;;  %v704_v5 = vmul.f32 %v701_v63, %v699_v49  ;;  %v355_v56 = vmul.f32 0.9478673, %v354_v14 }
  0x31   : > { %v706_v9 = vmul.f32 %v703_v0, %v699_v49  ;;  %v775_v42 = vmul.f32 %v772_v34, %v770_v60  ;;  %v696_v58 = vadd.s32 1, %v747_v26  ;;  %v777_v59 = vmul.f32 %v774_v48, %v770_v60 }
  0x32   : > { %v634_v12 = vadd.f32 0.28795174, %v633_v1  ;;  %v636_v13 = vadd.f32 -0.3607037, %v635_v2  ;;  %v705_v21 = vadd.f32 0.28795174, %v704_v5  ;;  %v626_v1 = vsel %vm622_vm0, %v625_v39, %v676_v15 }
  0x33   : > { %v707_v23 = vadd.f32 -0.3607037, %v706_v9  ;;  %v776_v54 = vadd.f32 0.28795174, %v775_v42  ;;  %v818_v63 = vadd.s32 4294967169, %v756_v31  ;;  %v1249_v10 = vmax.f32 %v355_v56, 0.0 }
  0x34   : > { %v637_v24 = vmul.f32 %v634_v12, %v628_v46  ;;  %v639_v25 = vmul.f32 %v636_v13, %v628_v46  ;;  %v708_v29 = vmul.f32 %v705_v21, %v699_v49  ;;  %v1253_v12 = vor.u32 1065353216, %v848_v3 }
  0x35   : > { %v710_v30 = vmul.f32 %v707_v23, %v699_v49  ;;  %v779_v0 = vmul.f32 %v776_v54, %v770_v60  ;;  %v646_v13 = vcvt.s32.f32 %v626_v1  ;;  %v767_v14 = vadd.s32 1, %v818_v63 }
  0x36   : > { %v638_v35 = vadd.f32 0.48090908, %v637_v24  ;;  %v640_v36 = vadd.f32 -0.72134733, %v639_v25  ;;  %v709_v40 = vadd.f32 0.48090908, %v708_v29 }
  0x37   : > { %v711_v41 = vadd.f32 -0.72134733, %v710_v30  ;;  %v780_v9 = vadd.f32 0.48090908, %v779_v0  ;;  %vm850_vm3 = vcmp.ge.f32.partialorder %v1253_v12, 1.4142135 }
  0x38   : > { %v641_v45 = vmul.f32 %v638_v35, %v628_v46  ;;  %v643_v47 = vmul.f32 %v1216_v43, %v640_v36  ;;  %v712_v52 = vmul.f32 %v709_v40, %v699_v49  ;;  %v778_v46 = vadd.f32 -0.3607037, %v777_v59 }
  0x39   : > { %v714_v53 = vmul.f32 %v1218_v44, %v711_v41  ;;  %v697_v49 = vsel %vm693_vm1, %v696_v58, %v747_v26  ;;  %v783_v21 = vmul.f32 %v780_v9, %v770_v60  ;;  %v851_v15 = vmul.f32 0.5, %v1253_v12 }
  0x3a   : > { %v642_v57 = vadd.f32 1.442695, %v641_v45  ;;  %v713_v62 = vadd.f32 1.442695, %v712_v52  ;;  %v781_v11 = vmul.f32 %v778_v46, %v770_v60  ;;  %v717_v25 = vcvt.s32.f32 %v697_v49 }
  0x3b   : > { %v784_v27 = vadd.f32 1.442695, %v783_v21  ;;  %v1260_v33 = vand.u32 2147483647, %v1249_v10  ;;  %v852_v60 = vsel %vm850_vm3, %v851_v15, %v1253_v12  ;;  %vm790_vm0 = vcmp.eq.f32.partialorder %v1191_v22, 1.0 }
  0x3c   : > { %v644_v2 = vadd.f32 %v643_v47, %v642_v57  ;;  %v715_v5 = vadd.f32 %v714_v53, %v713_v62  ;;  %v782_v32 = vadd.f32 -0.72134733, %v781_v11  ;;  %v1268_v29 = vadd.f32 -1.0, %v852_v60 }
  0x3d   : > { %v916_v34 = vand.u32 8388607, %v1260_v33  ;;  %v841_v21 = vand.u32 2139095040, %v1240_v4  ;;  %vm658_vm1 = vcmp.lt.f32.partialorder %v1178_v16, 0 }
  0x3e   : > { %v645_v23 = vmul.f32 %v1216_v43, %v644_v2  ;;  %v716_v24 = vmul.f32 %v1218_v44, %v715_v5  ;;  %v785_v26 = vmul.f32 %v1233_v55, %v782_v32  ;;  %v768_v43 = vsel %vm764_vm2, %v767_v14, %v818_v63  ;;  %v601_v5 = vld [vmem:[%s1172_s19 + $0x10] sm:$0xff] }
  0x3f   : > { %v788_v36 = vcvt.s32.f32 %v768_v43  ;;  %v1276_v37 = vmul.f32 %v1268_v29, %v1268_v29  ;;  %v917_v39 = vor.u32 8388608, %v916_v34  ;;  %v345_v14 = vadd.f32 1.0, %v601_v5 }
  0x40   : > { %v647_v30 = vadd.f32 %v646_v13, %v645_v23  ;;  %v786_v31 = vadd.f32 %v785_v26, %v784_v27  ;;  %v718_v44 = vadd.f32 %v717_v25, %v716_v24  ;;  %v842_v26 = vshrl.u32 %v841_v21, 23 }
  0x41   : > { %v857_v42 = vmul.f32 0.12621109, %v1276_v37  ;;  %v919_v45 = vand.u32 8388607, %v917_v39  ;;  %v859_v54 = vmul.f32 -0.20706727, %v1276_v37 }
  0x42   : > { %v787_v35 = vmul.f32 %v1233_v55, %v786_v31  ;;  %v652_v38 = vsel %vm651_vm4, %v1185_v19, %v647_v30  ;;  %v723_v40 = vsel %vm722_vm5, %v1188_v20, %v718_v44  ;;  %v1313_v27 = vmul.f32 0.5, %v345_v14 }
  0x43   : > { %v653_v55 = vsel %vm650_vm6, nan, %v652_v38  ;;  %v724_v47 = vsel %vm721_vm7, nan, %v723_v40  ;;  %v1286_v48 = vor.u32 1065353216, %v919_v45  ;;  %v858_v53 = vadd.f32 0.21545328, %v857_v42 }
  0x44   : > { %v789_v41 = vadd.f32 %v788_v36, %v787_v35  ;;  %v654_v50 = vsel %vm649_vm8, -inf, %v653_v55  ;;  %v725_v56 = vsel %vm720_vm10, -inf, %v724_v47  ;;  %v860_v63 = vadd.f32 -0.23896284, %v859_v54 }
  0x45   : > { %v922_v57 = vmul.f32 0.5, %v1286_v48  ;;  %vm921_vm14 = vcmp.ge.f32.partialorder %v1286_v48, 1.4142135  ;;  %v655_v58 = vsel %vm648_vm11, 0.0, %v654_v50  ;;  %v726_v62 = vsel %vm719_vm13, 0.0, %v725_v56 }
  0x46   : > { %v794_v52 = vsel %vm793_vm9, %v1191_v22, %v789_v41  ;;  %v861_v0 = vmul.f32 %v858_v53, %v1276_v37  ;;  %v656_v2 = vmul.f32 2.4, %v655_v58  ;;  %v727_v3 = vmul.f32 2.4, %v726_v62 }
  0x47   : > { %v795_v59 = vsel %vm792_vm12, nan, %v794_v52  ;;  %v923_v1 = vsel %vm921_vm14, %v922_v57, %v1286_v48  ;;  %v863_v49 = vmul.f32 %v860_v63, %v1276_v37  ;;  %vm729_vm2 = vcmp.lt.f32.partialorder %v1180_v17, 0 }
  0x48   : > { %v796_v46 = vsel %vm791_vm15, -inf, %v795_v59  ;;  %v862_v9 = vadd.f32 0.28795174, %v861_v0  ;;  %v1303_v11 = vadd.f32 -1.0, %v923_v1  ;;  %1087 = vpow2.f32 %v656_v2 }
  0x49   : > { %v797_v13 = vsel %vm790_vm0, 0.0, %v796_v46  ;;  %1089 = vpow2.f32 %v727_v3  ;;  %v864_v32 = vadd.f32 -0.3607037, %v863_v49  ;;  %vm659_vm4 = vcmp.eq.f32.partialorder %v1178_v16, 0 }
  0x4a   : > { %v798_v23 = vmul.f32 2.4, %v797_v13  ;;  %v865_v15 = vmul.f32 %v862_v9, %v1276_v37  ;;  %v1309_v24 = vmul.f32 %v1303_v11, %v1303_v11  ;;  %v904_v38 = vadd.s32 4294967169, %v842_v26 }
  0x4b   : > { %v867_v30 = vmul.f32 %v864_v32, %v1276_v37  ;;  %v912_v39 = vand.u32 2139095040, %v1260_v33  ;;  %v361_v40 = vadd.f32 0.055, %v1313_v27  ;;  %vm730_vm5 = vcmp.eq.f32.partialorder %v1180_v17, 0 }
  0x4c   : > { %v928_v25 = vmul.f32 0.12621109, %v1309_v24  ;;  %1091 = vpow2.f32 %v798_v23  ;;  %v866_v43 = vadd.f32 0.48090908, %v865_v15  ;;  %v930_v34 = vmul.f32 -0.20706727, %v1309_v24 }
  0x4d   : > { %v868_v42 = vadd.f32 -0.72134733, %v867_v30  ;;  %vm663_vm6 = vcmp.eq.f32.partialorder %v1185_v19, 2139095040  ;;  %vm734_vm7 = vcmp.eq.f32.partialorder %v1188_v20, 2139095040  ;;  %vm800_vm8 = vcmp.lt.f32.partialorder %v1182_v18, 0 }
  0x4e   : > { %v1088_v60 = vpop.eup %1087  ;;  %v929_v31 = vadd.f32 0.21545328, %v928_v25  ;;  %v869_v45 = vmul.f32 %v866_v43, %v1276_v37  ;;  %v931_v50 = vadd.f32 -0.23896284, %v930_v34  ;;  %v853_v54 = vadd.s32 1, %v904_v38 }
  0x4f   : > { %v1090_v44 = vpop.eup %1089  ;;  %v664_v36 = vsel %vm658_vm1, 2143289344, %v1088_v60  ;;  %v913_v56 = vshrl.u32 %v912_v39, 23  ;;  %v362_v57 = vmul.f32 0.9478673, %v361_v40  ;;  %vm231_vm9 = vcmp.gt.f32.partialorder %v1162_v6, 0.04045 }
  0x50   : > { %v932_v35 = vmul.f32 %v929_v31, %v1309_v24  ;;  %v735_v41 = vsel %vm729_vm2, 2143289344, %v1090_v44  ;;  %v665_v47 = vsel %vm659_vm4, 0, %v664_v36  ;;  %vm660_vm10 = vcmp.eq.f32.partialorder %v1178_v16, 1065353216 }
  0x51   : > { %v736_v53 = vsel %vm730_vm5, 0, %v735_v41  ;;  %v870_v58 = vadd.f32 1.442695, %v869_v45  ;;  %v871_v37 = vmul.f32 %v1268_v29, %v868_v42  ;;  %v670_v19 = vsel %vm663_vm6, 2139095040, %v665_v47 }
  0x52   : > { %v1092_v55 = vpop.eup %1091  ;;  %v933_v52 = vadd.f32 0.28795174, %v932_v35  ;;  %vm671_vm11 = vcmp.ne.f32.partialorder %v1178_v16, %v1178_v16  ;;  %vm801_vm12 = vcmp.eq.f32.partialorder %v1182_v18, 0  ;;  %v741_v62 = vsel %vm734_vm7, 2139095040, %v736_v53 }
  0x53   : > { %v806_v59 = vsel %vm800_vm8, 2143289344, %v1092_v55  ;;  %vm742_vm13 = vcmp.ne.f32.partialorder %v1180_v17, %v1180_v17  ;;  %v934_v63 = vmul.f32 %v931_v50, %v1309_v24  ;;  %v233_v1 = vmul.f32 0.07739938, %v1162_v6 }
  0x54   : > { %v936_v0 = vmul.f32 %v933_v52, %v1309_v24  ;;  %v854_v2 = vsel %vm850_vm3, %v853_v54, %v904_v38  ;;  %v975_v46 = vadd.s32 4294967169, %v913_v56  ;;  %v1342_v3 = vmax.f32 %v362_v57, 0.0 }
  0x55   : > { %v674_v5 = vsel %vm671_vm11, 2143289344, %v670_v19  ;;  %vm805_vm15 = vcmp.eq.f32.partialorder %v1191_v22, 2139095040  ;;  %v807_v20 = vsel %vm801_vm12, 0, %v806_v59  ;;  %v872_v9 = vadd.f32 %v871_v37, %v870_v58 }
  0x56   : > { %vm238_vm0 = vcmp.gt.f32.partialorder %v1164_v7, 0.04045  ;;  %vm731_vm1 = vcmp.eq.f32.partialorder %v1180_v17, 1065353216  ;;  %v745_v49 = vsel %vm742_vm13, 2143289344, %v741_v62  ;;  %v240_v13 = vmul.f32 0.07739938, %v1164_v7 }
  0x57   : > { %vm813_vm2 = vcmp.ne.f32.partialorder %v1182_v18, %v1182_v18  ;;  %v874_v12 = vcvt.s32.f32 %v854_v2  ;;  %v935_v14 = vadd.f32 -0.3607037, %v934_v63  ;;  %v937_v21 = vadd.f32 0.48090908, %v936_v0 }
  0x58   : > { %v675_v23 = vsel %vm660_vm10, 1065353216, %v674_v5  ;;  %v812_v32 = vsel %vm805_vm15, 2139095040, %v807_v20  ;;  %v924_v22 = vadd.s32 1, %v975_v46  ;;  %v1353_v15 = vand.u32 2147483647, %v1342_v3 }
  0x59   : > { %v746_v25 = vsel %vm731_vm1, 1065353216, %v745_v49  ;;  %v873_v17 = vmul.f32 %v1268_v29, %v872_v9  ;;  %v938_v26 = vmul.f32 %v935_v14, %v1309_v24  ;;  %v940_v60 = vmul.f32 %v937_v21, %v1309_v24 }
  0x5a   : > { %vm802_vm3 = vcmp.eq.f32.partialorder %v1182_v18, 1065353216  ;;  %v816_v43 = vsel %vm813_vm2, 2143289344, %v812_v32  ;;  %v234_v16 = vsel %vm231_vm9, %v675_v23, %v233_v1  ;;  %v241_v44 = vsel %vm238_vm0, %v746_v25, %v240_v13 }
  0x5b   : > { %v939_v30 = vadd.f32 -0.72134733, %v938_v26  ;;  %v941_v31 = vadd.f32 1.442695, %v940_v60  ;;  %v925_v34 = vsel %vm921_vm14, %v924_v22, %v975_v46  ;;  %v987_v29 = vand.u32 8388607, %v1353_v15 }
  0x5c   : > { %v247_v35 = vmul.f32 0.07739938, %v1166_v8  ;;  %v875_v36 = vadd.f32 %v874_v12, %v873_v17  ;;  %vm245_vm4 = vcmp.gt.f32.partialorder %v1166_v8, 0.04045  ;;  %v817_v18 = vsel %vm802_vm3, 1065353216, %v816_v43 }
  0x5d   : > { %v942_v24 = vmul.f32 %v1303_v11, %v939_v30  ;;  %vm879_vm5 = vweird.f32 %v1240_v4  ;;  %v988_v6 = vor.u32 8388608, %v987_v29  ;;  %v249_v38 = vmul.f32 0.43394637, %v234_v16 }
  0x5e   : > { %v250_v39 = vmul.f32 0.37621388, %v241_v44  ;;  %v945_v40 = vcvt.s32.f32 %v925_v34  ;;  %v254_v41 = vmul.f32 0.212671, %v234_v16  ;;  %vm878_vm14 = vcmp.lt.f32.partialorder %v1240_v4, 0.0 }
  0x5f   : > { %v943_v7 = vadd.f32 %v942_v24, %v941_v31  ;;  %v990_v48 = vand.u32 8388607, %v988_v6  ;;  %v248_v42 = vsel %vm245_vm4, %v817_v18, %v247_v35  ;;  %v255_v45 = vmul.f32 0.71516, %v241_v44 }
  0x60   : > { %v880_v55 = vsel %vm879_vm5, %v1240_v4, %v875_v36  ;;  %v259_v50 = vmul.f32 0.017756674, %v234_v16  ;;  %v260_v8 = vmul.f32 0.10946888, %v241_v44  ;;  %vm950_vm6 = vweird.f32 %v1260_v33 }
  0x61   : > { %v944_v47 = vmul.f32 %v1303_v11, %v943_v7  ;;  %v1374_v52 = vor.u32 1065353216, %v990_v48  ;;  %v251_v53 = vadd.f32 %v250_v39, %v249_v38  ;;  %vm877_vm7 = vcmp.eq.f32.partialorder %v1240_v4, 0.0 }
  0x62   : > { %vm949_vm8 = vcmp.lt.f32.partialorder %v1260_v33, 0.0  ;;  %v252_v56 = vmul.f32 0.18982503, %v248_v42  ;;  %v881_v57 = vsel %vm878_vm14, nan, %v880_v55  ;;  %v256_v37 = vadd.f32 %v255_v45, %v254_v41 }
  0x63   : > { %v946_v54 = vadd.f32 %v945_v40, %v944_v47  ;;  %vm992_vm9 = vcmp.ge.f32.partialorder %v1374_v52, 1.4142135  ;;  %v993_v58 = vmul.f32 0.5, %v1374_v52  ;;  %v257_v11 = vmul.f32 0.072169, %v248_v42 }
  0x64   : > { %vm948_vm10 = vcmp.eq.f32.partialorder %v1260_v33, 0.0  ;;  %v261_v59 = vadd.f32 %v260_v8, %v259_v50  ;;  %v262_v62 = vmul.f32 0.8727046, %v248_v42  ;;  %vm876_vm11 = vcmp.eq.f32.partialorder %v1240_v4, 1.0 }
  0x65   : > { %v951_v19 = vsel %vm950_vm6, %v1260_v33, %v946_v54  ;;  %v994_v0 = vsel %vm992_vm9, %v993_v58, %v1374_v52  ;;  %v882_v1 = vsel %vm877_vm7, -inf, %v881_v57  ;;  %v1390_v46 = vadd.f32 %v252_v56, %v251_v53 }
  0x66   : > { %v952_v63 = vsel %vm949_vm8, nan, %v951_v19  ;;  %v1388_v2 = vadd.f32 -1.0, %v994_v0  ;;  %vm947_vm12 = vcmp.eq.f32.partialorder %v1260_v33, 1.0  ;;  %v983_v20 = vand.u32 2139095040, %v1353_v15 }
  0x67   : > { %v953_v5 = vsel %vm948_vm10, -inf, %v952_v63  ;;  %v1394_v9 = vadd.f32 %v257_v11, %v256_v37  ;;  %v1398_v13 = vadd.f32 %v262_v62, %v261_v59  ;;  %v883_v12 = vsel %vm876_vm11, 0.0, %v882_v1 }
  0x68   : > { %v998_v49 = vmul.f32 %v1388_v2, %v1388_v2  ;;  %v954_v14 = vsel %vm947_vm12, 0.0, %v953_v5  ;;  %v1401_v23 = vmax.f32 %v1390_v46, 0.008856  ;;  %v984_v32 = vshrl.u32 %v983_v20, 23 }
  0x69   : > { %v1404_v25 = vmax.f32 %v1394_v9, 0.008856  ;;  %v884_v17 = vmul.f32 2.4, %v883_v12  ;;  %v1407_v60 = vmax.f32 %v1398_v13, 0.008856  ;;  %vm899_vm1 = vcmp.ne.f32.partialorder %v1230_v51, %v1230_v51 }
  0x6a   : > { %v999_v21 = vmul.f32 0.12621109, %v998_v49  ;;  %v1001_v22 = vmul.f32 -0.20706727, %v998_v49  ;;  %v955_v43 = vmul.f32 2.4, %v954_v14  ;;  %v266_v16 = vcvt.s32.f32 %v1401_v23 }
  0x6b   : > { %v1046_v44 = vadd.s32 4294967169, %v984_v32  ;;  %v290_v29 = vcvt.s32.f32 %v1404_v25  ;;  %1093 = vpow2.f32 %v884_v17  ;;  %v314_v36 = vcvt.s32.f32 %v1407_v60 }
  0x6c   : > { %v1000_v26 = vadd.f32 0.21545328, %v999_v21  ;;  %v1002_v30 = vadd.f32 -0.23896284, %v1001_v22  ;;  %1095 = vpow2.f32 %v955_v43  ;;  %v267_v6 = vmul.f32 0.33333334, %v266_v16 }
  0x6d   : > { %v995_v38 = vadd.s32 1, %v1046_v44  ;;  %v291_v7 = vmul.f32 0.33333334, %v290_v29  ;;  %v315_v41 = vmul.f32 0.33333334, %v314_v36  ;;  %vm886_vm13 = vcmp.lt.f32.partialorder %v1230_v51, 0 }
  0x6e   : > { %v1003_v31 = vmul.f32 %v1000_v26, %v998_v49  ;;  %v1005_v34 = vmul.f32 %v1002_v30, %v998_v49  ;;  %v268_v47 = vsub.f32 1.4199671e+09, %v267_v6  ;;  %vm957_vm15 = vcmp.lt.f32.partialorder %v1249_v10, 0 }
  0x6f   : > { %v996_v50 = vsel %vm992_vm9, %v995_v38, %v1046_v44  ;;  %v292_v53 = vsub.f32 1.4199671e+09, %v291_v7  ;;  %v316_v56 = vsub.f32 1.4199671e+09, %v315_v41  ;;  %vm887_vm0 = vcmp.eq.f32.partialorder %v1230_v51, 0 }
  0x70   : > { %v1004_v35 = vadd.f32 0.28795174, %v1003_v31  ;;  %v1006_v24 = vadd.f32 -0.3607037, %v1005_v34  ;;  %vm958_vm2 = vcmp.eq.f32.partialorder %v1249_v10, 0  ;;  %v1016_v11 = vcvt.s32.f32 %v996_v50 }
  0x71   : > { %v1094_v42 = vpop.eup %1093  ;;  %vm820_vm3 = vcmp.lt.s32.totalorder %v268_v47, 0  ;;  %v821_v19 = vceil.f32 %v268_v47  ;;  %v822_v52 = vfloor.f32 %v268_v47  ;;  %vm891_vm4 = vcmp.eq.f32.partialorder %v1240_v4, 2139095040 }
  0x72   : > { %v1007_v18 = vmul.f32 %v1004_v35, %v998_v49  ;;  %v1009_v39 = vmul.f32 %v1006_v24, %v998_v49  ;;  %v1096_v55 = vpop.eup %1095  ;;  %v892_v57 = vsel %vm886_vm13, 2143289344, %v1094_v42  ;;  %vm825_vm5 = vcmp.lt.s32.totalorder %v292_v53, 0 }
  0x73   : > { %v963_v58 = vsel %vm957_vm15, 2143289344, %v1096_v55  ;;  %v826_v59 = vceil.f32 %v292_v53  ;;  %v893_v62 = vsel %vm887_vm0, 0, %v892_v57  ;;  %v827_v0 = vfloor.f32 %v292_v53 }
  0x74   : > { %v1008_v40 = vadd.f32 0.48090908, %v1007_v18  ;;  %v1010_v48 = vadd.f32 -0.72134733, %v1009_v39  ;;  %vm962_vm14 = vcmp.eq.f32.partialorder %v1260_v33, 2139095040  ;;  %v964_v1 = vsel %vm958_vm2, 0, %v963_v58 }
  0x75   : > { %vm1021_vm6 = vweird.f32 %v1353_v15  ;;  %vm830_vm7 = vcmp.lt.s32.totalorder %v316_v56, 0  ;;  %v831_v5 = vceil.f32 %v316_v56  ;;  %vm1020_vm8 = vcmp.lt.f32.partialorder %v1353_v15, 0.0 }
  0x76   : > { %v1011_v45 = vmul.f32 %v1008_v40, %v998_v49  ;;  %v1013_v8 = vmul.f32 %v1388_v2, %v1010_v48  ;;  %v823_v49 = vsel %vm820_vm3, %v821_v19, %v822_v52  ;;  %v832_v12 = vfloor.f32 %v316_v56 }
  0x77   : > { %v898_v4 = vsel %vm891_vm4, 2139095040, %v893_v62  ;;  %vm1019_vm9 = vcmp.eq.f32.partialorder %v1353_v15, 0.0  ;;  %v969_v14 = vsel %vm962_vm14, 2139095040, %v964_v1  ;;  %vm970_vm10 = vcmp.ne.f32.partialorder %v1249_v10, %v1249_v10 }
  0x78   : > { %v1012_v54 = vadd.f32 1.442695, %v1011_v45  ;;  %vm1018_vm11 = vcmp.eq.f32.partialorder %v1353_v15, 1.0  ;;  %v1433_v32 = vcvt.f32.s32 %v823_v49  ;;  %vm888_vm12 = vcmp.eq.f32.partialorder %v1230_v51, 1065353216 }
  0x79   : > { %v902_v22 = vsel %vm899_vm1, 2143289344, %v898_v4  ;;  %v833_v26 = vsel %vm830_vm7, %v831_v5, %v832_v12  ;;  %vm959_vm13 = vcmp.eq.f32.partialorder %v1249_v10, 1065353216  ;;  %v973_v43 = vsel %vm970_vm10, 2143289344, %v969_v14 }
  0x7a   : > { %v1014_v37 = vadd.f32 %v1013_v8, %v1012_v54  ;;  %v352_v16 = vmul.f32 0.07739938, %v1196_v28  ;;  %vm350_vm15 = vcmp.gt.f32.partialorder %v1196_v28, 0.04045  ;;  %v903_v34 = vsel %vm888_vm12, 1065353216, %v902_v22 }
  0x7b   : > { %v359_v29 = vmul.f32 0.07739938, %v1237_v61  ;;  %v834_v35 = vcvt.f32.s32 %v833_v26  ;;  %vm357_vm0 = vcmp.gt.f32.partialorder %v1237_v61, 0.04045  ;;  %v974_v51 = vsel %vm959_vm13, 1065353216, %v973_v43 }
  0x7c   : > { %v1015_v63 = vmul.f32 %v1388_v2, %v1014_v37  ;;  %v828_v2 = vsel %vm825_vm5, %v826_v59, %v827_v0  ;;  %v272_v36 = vmul.f32 %v1433_v32, %v1433_v32  ;;  %v353_v24 = vsel %vm350_vm15, %v903_v34, %v352_v16 }
  0x7d   : > { %v829_v31 = vcvt.f32.s32 %v828_v2  ;;  %v1448_v18 = vmul.f32 0.33333334, %v1401_v23  ;;  %v360_v6 = vsel %vm357_vm0, %v974_v51, %v359_v29  ;;  %v1451_v38 = vmul.f32 0.33333334, %v1404_v25 }
  0x7e   : > { %v1017_v20 = vadd.f32 %v1016_v11, %v1015_v63  ;;  %v1454_v28 = vmul.f32 0.33333334, %v1407_v60  ;;  %v320_v39 = vmul.f32 %v834_v35, %v834_v35  ;;  %vm1028_vm1 = vcmp.lt.f32.partialorder %v1342_v3, 0 }
  0x7f   : > { %v296_v10 = vmul.f32 %v829_v31, %v829_v31  ;;  %v273_v61 = vmul.f32 %v1433_v32, %v272_v36  ;;  %vm1029_vm2 = vcmp.eq.f32.partialorder %v1342_v3, 0  ;;  %vm1033_vm3 = vcmp.eq.f32.partialorder %v1353_v15, 2139095040 }
  0x80   : > { %v1022_v33 = vsel %vm1021_vm6, %v1353_v15, %v1017_v20  ;;  %v368_v7 = vmul.f32 0.43394637, %v353_v24  ;;  %v369_v48 = vmul.f32 0.37621388, %v360_v6  ;;  %v373_v42 = vmul.f32 0.212671, %v353_v24 }
  0x81   : > { %v1023_v21 = vsel %vm1020_vm8, nan, %v1022_v33  ;;  %v297_v41 = vmul.f32 %v829_v31, %v296_v10  ;;  %v378_v45 = vmul.f32 0.017756674, %v353_v24  ;;  %vm1041_vm4 = vcmp.ne.f32.partialorder %v1342_v3, %v1342_v3 }
  0x82   : > { %v1024_v17 = vsel %vm1019_vm9, -inf, %v1023_v21  ;;  %v374_v47 = vmul.f32 0.71516, %v360_v6  ;;  %v379_v50 = vmul.f32 0.10946888, %v360_v6  ;;  %v321_v8 = vmul.f32 %v834_v35, %v320_v39 }
  0x83   : > { %v1025_v30 = vsel %vm1018_vm11, 0.0, %v1024_v17  ;;  %vm1030_vm5 = vcmp.eq.f32.partialorder %v1342_v3, 1065353216  ;;  %v366_v54 = vmul.f32 0.07739938, %v1313_v27  ;;  %vm364_vm14 = vcmp.gt.f32.partialorder %v1313_v27, 0.04045 }
  0x84   : > { %v1026_v44 = vmul.f32 2.4, %v1025_v30  ;;  %v274_v57 = vmul.f32 %v273_v61, %v1448_v18  ;;  %v370_v11 = vadd.f32 %v369_v48, %v368_v7  ;;  %v375_v19 = vadd.f32 %v374_v47, %v373_v42 }
  0x85   : > { %v380_v52 = vadd.f32 %v379_v50, %v378_v45  ;;  %v298_v59 = vmul.f32 %v297_v41, %v1451_v38  ;;  %v322_v62 = vmul.f32 %v321_v8, %v1454_v28  ;;  %vm284_vm9 = vcmp.gt.f32.partialorder %v1390_v46, 0.008856 }
  0x86   : > { %1097 = vpow2.f32 %v1026_v44  ;;  %v275_v5 = vsub.f32 1.3333334, %v274_v57  ;;  %vm308_vm10 = vcmp.gt.f32.partialorder %v1394_v9, 0.008856  ;;  %vm332_vm11 = vcmp.gt.f32.partialorder %v1398_v13, 0.008856 }
  0x87   : > { %v299_v49 = vsub.f32 1.3333334, %v298_v59  ;;  %v323_v12 = vsub.f32 1.3333334, %v322_v62 }
  0x88   : > { %v276_v2 = vmul.f32 %v1433_v32, %v275_v5 }
  0x89   : > { %v300_v17 = vmul.f32 %v829_v31, %v299_v49  ;;  %v324_v26 = vmul.f32 %v834_v35, %v323_v12 }
  0x8a   : > { %v277_v34 = vmul.f32 %v276_v2, %v276_v2 }
  0x8b   : > { %v301_v36 = vmul.f32 %v300_v17, %v300_v17  ;;  %v325_v10 = vmul.f32 %v324_v26, %v324_v26 }
  0x8c   : > { %v1098_v40 = vpop.eup %1097  ;;  %v278_v35 = vmul.f32 %v277_v34, %v276_v2 }
  0x8d   : > { %v1034_v55 = vsel %vm1028_vm1, 2143289344, %v1098_v40  ;;  %v302_v42 = vmul.f32 %v301_v36, %v300_v17  ;;  %v326_v47 = vmul.f32 %v325_v10, %v324_v26 }
  0x8e   : > { %v1035_v53 = vsel %vm1029_vm2, 0, %v1034_v55 }
  0x8f   : > { %v1040_v56 = vsel %vm1033_vm3, 2139095040, %v1035_v53  ;;  %v327_v59 = vmul.f32 %v326_v47, %v1454_v28 }
  0x90   : > { %v1044_v58 = vsel %vm1041_vm4, 2143289344, %v1040_v56 }
  0x91   : > { %v1045_v37 = vsel %vm1030_vm5, 1065353216, %v1044_v58 }
  0x92   : > { %v367_v3 = vsel %vm364_vm14, %v1045_v37, %v366_v54  ;;  %v279_v54 = vmul.f32 %v278_v35, %v1448_v18 }
  0x93   : > { %v371_v63 = vmul.f32 0.18982503, %v367_v3  ;;  %v376_v0 = vmul.f32 0.072169, %v367_v3  ;;  %v381_v1 = vmul.f32 0.8727046, %v367_v3 }
  0x95   : > { %v1470_v27 = vadd.f32 %v371_v63, %v370_v11  ;;  %v1472_v15 = vadd.f32 %v376_v0, %v375_v19  ;;  %v1474_v20 = vadd.f32 %v381_v1, %v380_v52  ;;  %v303_v19 = vmul.f32 %v302_v42, %v1451_v38 }
  0x96   : > { %v208_v63 = vlaneseq  ;;  %v280_v0 = vsub.f32 1.3333334, %v279_v54 }
  0x97   : > { %v1477_v4 = vmax.f32 %v1470_v27, 0.008856  ;;  %v1480_v14 = vmax.f32 %v1472_v15, 0.008856  ;;  %v1483_v33 = vmax.f32 %v1474_v20, 0.008856 }
  0x98   : > { %v304_v18 = vsub.f32 1.3333334, %v303_v19  ;;  %v404_v42 = vmul.f32 7.787, %v1470_v27  ;;  %v428_v47 = vmul.f32 7.787, %v1472_v15 }
  0x99   : > { %v385_v21 = vcvt.s32.f32 %v1477_v4  ;;  %v409_v22 = vcvt.s32.f32 %v1480_v14  ;;  %v433_v43 = vcvt.s32.f32 %v1483_v33  ;;  %v390_v50 = vmul.f32 0.33333334, %v1477_v4 }
  0x9a   : > { %v414_v56 = vmul.f32 0.33333334, %v1480_v14  ;;  %v438_v37 = vmul.f32 0.33333334, %v1483_v33  ;;  %v305_v28 = vmul.f32 %v304_v18, %v300_v17  ;;  %v333_v17 = vmul.f32 7.787, %v1398_v13 }
  0x9b   : > { %v386_v30 = vmul.f32 0.33333334, %v385_v21  ;;  %v410_v16 = vmul.f32 0.33333334, %v409_v22  ;;  %v434_v44 = vmul.f32 0.33333334, %v433_v43 }
  0x9c   : > { %v328_v21 = vsub.f32 1.3333334, %v327_v59  ;;  %vm403_vm12 = vcmp.gt.f32.partialorder %v1470_v27, 0.008856  ;;  %v429_v59 = vadd.f32 0.13793103, %v428_v47 }
  0x9d   : > { %v387_v29 = vsub.f32 1.4199671e+09, %v386_v30  ;;  %v411_v51 = vsub.f32 1.4199671e+09, %v410_v16  ;;  %v435_v24 = vsub.f32 1.4199671e+09, %v434_v44  ;;  %v281_v16 = vmul.f32 %v280_v0, %v276_v2 }
  0x9e   : > { %v209_v30 = vshrl.u32 %v208_v63, 7  ;;  %v329_v36 = vmul.f32 %v328_v21, %v324_v26  ;;  %vm427_vm13 = vcmp.gt.f32.partialorder %v1472_v15, 0.008856  ;;  %vm451_vm15 = vcmp.gt.f32.partialorder %v1474_v20, 0.008856 }
  0x9f   : > { %vm1048_vm6 = vcmp.lt.s32.totalorder %v387_v29, 0  ;;  %v1049_v6 = vceil.f32 %v387_v29  ;;  %v1050_v32 = vfloor.f32 %v387_v29  ;;  %vm1053_vm7 = vcmp.lt.s32.totalorder %v411_v51, 0 }
  0xa0   : > { %v1054_v39 = vceil.f32 %v411_v51  ;;  %v1055_v61 = vfloor.f32 %v411_v51  ;;  %vm1058_vm8 = vcmp.lt.s32.totalorder %v435_v24, 0  ;;  %v1059_v31 = vceil.f32 %v435_v24 }
  0xa1   : > { %v1051_v7 = vsel %vm1048_vm6, %v1049_v6, %v1050_v32  ;;  %v1060_v40 = vfloor.f32 %v435_v24  ;;  %v285_v29 = vmul.f32 7.787, %v1390_v46  ;;  %v211_v6 = vand.u32 127, %v208_v63 }
  0xa2   : > { %v1052_v41 = vcvt.f32.s32 %v1051_v7  ;;  %v1056_v48 = vsel %vm1053_vm7, %v1054_v39, %v1055_v61  ;;  %v212_v32 = vmul.u32 128, %v209_v30  ;;  %v282_v39 = vmul.f32 %v281_v16, %v1401_v23 }
  0xa3   : > { %v1057_v45 = vcvt.f32.s32 %v1056_v48  ;;  %v1061_v55 = vsel %vm1058_vm8, %v1059_v31, %v1060_v40  ;;  %v309_v31 = vmul.f32 7.787, %v1394_v9  ;;  %v286_v7 = vadd.f32 0.13793103, %v285_v29 }
  0xa4   : > { %v391_v8 = vmul.f32 %v1052_v41, %v1052_v41  ;;  %v1062_v53 = vcvt.f32.s32 %v1061_v55  ;;  %v306_v40 = vmul.f32 %v305_v28, %v1404_v25  ;;  %v330_v26 = vmul.f32 %v329_v36, %v1407_v60 }
  0xa5   : > { %v415_v57 = vmul.f32 %v1057_v45, %v1057_v45  ;;  %v283_v23 = vmul.f32 %v282_v39, %v281_v16  ;;  %v452_v25 = vmul.f32 7.787, %v1474_v20  ;;  %v213_v0 = vadd.s32 %v212_v32, %v211_v6 }
  0xa6   : > { %v392_v58 = vmul.f32 %v1052_v41, %v391_v8  ;;  %v439_v11 = vmul.f32 %v1062_v53, %v1062_v53  ;;  %v307_v54 = vmul.f32 %v306_v40, %v305_v28 }
  0xa7   : > { %v416_v52 = vmul.f32 %v1057_v45, %v415_v57  ;;  %v331_v57 = vmul.f32 %v330_v26, %v329_v36  ;;  %v287_v19 = vsel %vm284_vm9, %v283_v23, %v286_v7  ;;  %v453_v63 = vadd.f32 0.13793103, %v452_v25 }
  0xa8   : > { %v393_v62 = vmul.f32 %v392_v58, %v390_v50  ;;  %v440_v3 = vmul.f32 %v1062_v53, %v439_v11  ;;  %vm467_vm0 = vcmp.lt.s32.totalorder %v213_v0, 256 }
  0xa9   : > { %v417_v1 = vmul.f32 %v416_v52, %v414_v56 }
  0xaa   : > { %v394_v5 = vsub.f32 1.3333334, %v393_v62  ;;  %v441_v49 = vmul.f32 %v440_v3, %v438_v37 }
  0xab   : > { %v418_v12 = vsub.f32 1.3333334, %v417_v1 }
  0xac   : > { %v395_v22 = vmul.f32 %v1052_v41, %v394_v5  ;;  %v442_v43 = vsub.f32 1.3333334, %v441_v49 }
  0xad   : > { %v419_v44 = vmul.f32 %v1057_v45, %v418_v12 }
  0xae   : > { %v396_v34 = vmul.f32 %v395_v22, %v395_v22  ;;  %v443_v38 = vmul.f32 %v1062_v53, %v442_v43 }
  0xaf   : > { %v420_v51 = vmul.f32 %v419_v44, %v419_v44 }
  0xb0   : > { %v397_v10 = vmul.f32 %v396_v34, %v395_v22  ;;  %v444_v24 = vmul.f32 %v443_v38, %v443_v38 }
  0xb1   : > { %v421_v61 = vmul.f32 %v420_v51, %v419_v44 }
  0xb2   : > { %v398_v2 = vmul.f32 %v397_v10, %v390_v50  ;;  %v445_v35 = vmul.f32 %v444_v24, %v443_v38  ;;  %v310_v50 = vadd.f32 0.13793103, %v309_v31 }
  0xb3   : > { %v422_v41 = vmul.f32 %v421_v61, %v414_v56  ;;  %v334_v56 = vadd.f32 0.13793103, %v333_v17 }
  0xb4   : > { %v399_v48 = vsub.f32 1.3333334, %v398_v2  ;;  %v446_v45 = vmul.f32 %v445_v35, %v438_v37  ;;  %v405_v37 = vadd.f32 0.13793103, %v404_v42 }
  0xb5   : > { %v423_v55 = vsub.f32 1.3333334, %v422_v41  ;;  %v335_v46 = vsel %vm332_vm11, %v331_v57, %v334_v56 }
  0xb6   : > { %v400_v8 = vmul.f32 %v399_v48, %v395_v22  ;;  %v447_v53 = vsub.f32 1.3333334, %v446_v45 }
  0xb7   : > { %v424_v60 = vmul.f32 %v423_v55, %v419_v44 }
  0xb8   : > { %v401_v58 = vmul.f32 %v400_v8, %v1477_v4  ;;  %v448_v11 = vmul.f32 %v447_v53, %v443_v38  ;;  %v311_v4 = vsel %vm308_vm10, %v307_v54, %v310_v50 }
  0xb9   : > { %v425_v52 = vmul.f32 %v424_v60, %v1480_v14 }
  0xba   : > { %v402_v62 = vmul.f32 %v401_v58, %v400_v8  ;;  %v449_v3 = vmul.f32 %v448_v11, %v1483_v33 }
  0xbb   : > { %v426_v1 = vmul.f32 %v425_v52, %v424_v60 }
  0xbc   : > { %v406_v27 = vsel %vm403_vm12, %v402_v62, %v405_v37  ;;  %v450_v14 = vmul.f32 %v449_v3, %v448_v11 }
  0xbd   : > { %v430_v5 = vsel %vm427_vm13, %v426_v1, %v429_v59  ;;  %v457_v49 = vsub.f32 %v287_v19, %v406_v27 }
  0xbe   : > { %v454_v18 = vsel %vm451_vm15, %v450_v14, %v453_v63  ;;  %v455_v15 = vsub.f32 %v311_v4, %v430_v5 }
  0xbf   : > { %v460_v12 = vsub.f32 %v335_v46, %v454_v18 }
  0xc0   : > { %v456_v9 = vand.u32 2147483647, %v455_v15  ;;  %v458_v33 = vsub.f32 %v457_v49, %v455_v15 }
  0xc1   : > { %v461_v21 = vsub.f32 %v455_v15, %v460_v12 }
  0xc2   : > { %v459_v22 = vand.u32 2147483647, %v458_v33  ;;  %v468_v20 = vsel %vm467_vm0, %v456_v9, 0.0 }
  0xc3   : > { %v462_v43 = vand.u32 2147483647, %v461_v21  ;;  %474 = vst [vmem:[%s207_s22] sm:$0xff] %v468_v20 }
  0xc4   : > { %v469_v13 = vsel %vm467_vm0, %v459_v22, 0.0 }
  0xc5   : > { %v470_v30 = vsel %vm467_vm0, %v462_v43, 0.0  ;;  %602 = vst [vmem:[%s207_s22 + $0x8] sm:$0xff] %v469_v13 }
  0xc6   : > { %603 = vst [vmem:[%s207_s22 + $0x10] sm:$0xff] %v470_v30 }
  0xc7 PF: > { %s12_s11 = sadd.s32 1, %s1121_s11   ;;  %s1535_s9 = smov %s1117_s10 }
  0xc8   : > { %p9_p5 = scmp.ge.s32.totalorder %s12_s11, 4   ;;  %s1536_s10 = smov %s1538_s12 }
  0xca   :  { %11 = sbr.rel (!%p9_p5) target bundleno = 2 (0x2), region = 67 }

</bundles_post_ra>
